<compile_context>
chip_gen: v5e
topology: v5e:2x2
jax: 0.10.0
libtpu: 0.0.40
codegen_flags: <defaults>
</compile_context>

<pallas_src>
import functools
import math

import jax
import jax.numpy as jnp
from jax import lax
from jax.experimental import pallas as pl
from jax.experimental.pallas import tpu as pltpu

_NEG = -1e30  # effectively -inf, but avoids inf-inf corner cases


def _sogclr_kernel(scale_ref,
                   img_q_ref, txt_q_ref, img_k_ref, txt_k_ref, diag_ref,
                   u_im_old_ref, u_tt_old_ref,
                   u_im_out_ref, u_tt_out_ref, loss_out_ref,
                   m_im, s0_im, s1_im, dd_im,
                   m_tt, s0_tt, s1_tt, dd_tt,
                   *, gamma, eps, offset, n_total, n_padded):
    i = pl.program_id(0)           # row-block index   ("parallel")
    j = pl.program_id(1)           # column-block index ("arbitrary" reduction)
    ncb = pl.num_programs(1)
    bm = img_q_ref.shape[0]
    bn = img_k_ref.shape[0]

    @pl.when(j == 0)
    def _init():
        for r in (m_im, m_tt, dd_im, dd_tt):
            r[...] = jnp.full_like(r, _NEG)
        for r in (s0_im, s0_tt, s1_im, s1_tt):
            r[...] = jnp.zeros_like(r)

    scale = scale_ref[0, 0]
    diag = diag_ref[...]                                # (bm, 1) f32, hoisted

    dn = (((1,), (1,)), ((), ()))                       # contract last dims, no transpose
    sim_im = lax.dot_general(img_q_ref[...], txt_k_ref[...], dn,
                             preferred_element_type=jnp.float32)    # (bm, bn)
    sim_tt = lax.dot_general(txt_q_ref[...], img_k_ref[...], dn,
                             preferred_element_type=jnp.float32)    # (bm, bn)

    d_im = (sim_im - diag) * scale
    d_tt = (sim_tt - diag) * scale

    neg = jnp.float32(_NEG)

    def _acc(d, invalid, m_ref, s0_ref, s1_ref):
        # One running max per distribution; a single full-tile exp feeds both the
        # logsumexp sum (s0) and the weighted sum_j d*exp(d) (s1).
        dm = d if invalid is None else jnp.where(invalid, neg, d)
        m_old = m_ref[...]
        m_new = jnp.maximum(m_old, jnp.max(dm, axis=-1, keepdims=True))
        alpha = jnp.exp(m_old - m_new)
        p = jnp.exp(dm - m_new)
        s0_ref[...] = s0_ref[...] * alpha + jnp.sum(p, axis=-1, keepdims=True)
        s1_ref[...] = s1_ref[...] * alpha + jnp.sum(d * p, axis=-1, keepdims=True)
        m_ref[...] = m_new

    row_lo = i * bm + offset        # first diagonal column of this row block
    col_lo = j * bn
    overlap = jnp.logical_and(row_lo < col_lo + bn, col_lo < row_lo + bm)
    if n_padded > n_total:
        needs_mask = jnp.logical_or(overlap, (col_lo + bn) > n_total)
    else:
        needs_mask = overlap

    @pl.when(needs_mask)
    def _masked():
        rows = lax.broadcasted_iota(jnp.int32, (bm, bn), 0) + row_lo
        cols = lax.broadcasted_iota(jnp.int32, (bm, bn), 1) + col_lo
        is_diag = rows == cols
        invalid = jnp.logical_or(is_diag, cols >= n_total)
        has = jnp.sum(jnp.where(is_diag, 1.0, 0.0), axis=-1, keepdims=True) > 0.0
        dd_im[...] = jnp.where(
            has, jnp.sum(jnp.where(is_diag, d_im, 0.0), axis=-1, keepdims=True), dd_im[...])
        dd_tt[...] = jnp.where(
            has, jnp.sum(jnp.where(is_diag, d_tt, 0.0), axis=-1, keepdims=True), dd_tt[...])
        _acc(d_im, invalid, m_im, s0_im, s1_im)
        _acc(d_tt, invalid, m_tt, s0_tt, s1_tt)

    @pl.when(jnp.logical_not(needs_mask))
    def _plain():
        _acc(d_im, None, m_im, s0_im, s1_im)
        _acc(d_tt, None, m_tt, s0_tt, s1_tt)

    @pl.when(j == ncb - 1)
    def _finalize():
        log_eps = jnp.float32(math.log(eps))
        c = jnp.float32(math.log(eps * n_total))

        def _lse(m_ref, s0_ref, dd_ref):
            # sum_off exp(d - c) = exp(m - c) * s0 ; diag contributes exp(dd).
            a = m_ref[...] - c
            dd = dd_ref[...]
            hi = jnp.maximum(a, dd)
            return hi + jnp.log(s0_ref[...] * jnp.exp(a - hi) + jnp.exp(dd - hi)) + log_eps

        lse_im = _lse(m_im, s0_im, dd_im)
        lse_tt = _lse(m_tt, s0_tt, dd_tt)

        if gamma == 1.0:
            u_im = lse_im
            u_tt = lse_tt
        else:
            lg1m = jnp.float32(math.log(1.0 - gamma))
            lg = jnp.float32(math.log(gamma))

            def _mix(u_old, lse):
                bad = (u_old == 0.0) | jnp.isinf(u_old) | jnp.isnan(u_old)
                ud = u_old + lg1m - (lse + lg)
                u = jnp.where(ud > 0,
                              u_old + lg1m + jnp.log(1.0 + jnp.exp(-ud)),
                              lse + lg + jnp.log(1.0 + jnp.exp(ud)))
                return jnp.where(bad, lse, u)

            u_im = _mix(u_im_old_ref[...].astype(jnp.float32), lse_im)
            u_tt = _mix(u_tt_old_ref[...].astype(jnp.float32), lse_tt)

        inv_den = jnp.float32(1.0 / (n_total - 1))   # divide by full batch, not tile
        loss_im = s1_im[...] * jnp.exp(m_im[...] - u_im) * inv_den
        loss_tt = s1_tt[...] * jnp.exp(m_tt[...] - u_tt) * inv_den

        u_im_out_ref[...] = u_im
        u_tt_out_ref[...] = u_tt
        loss_out_ref[...] = loss_im + loss_tt


def _round_up(x, m):
    return ((x + m - 1) // m) * m


def _vmem_capacity_bytes():
    try:
        return int(pltpu.get_tpu_info().vmem_capacity_bytes)
    except Exception:
        return 64 << 20          # conservative per-core fallback (v7x-sized)


def sogclr_loss(image_features, text_features, u_im, u_tt, logit_scale, *,
                gamma=1.0, eps=1e-14, rho=8.0, multiply_tau=True,
                loss_weight=1.0, offset=0,
                block_rows=None, block_cols=None, matmul_dtype=None):
    """Pallas implementation of SogCLRLoss.forward (single-device path).

    Returns (loss, dist_loss, (u_im_new, u_tt_new)), mirroring the torch module's
    (loss, dist_loss, gather_list) output.
    """
    B, D = image_features.shape
    assert text_features.shape == (B, D)
    assert B >= 2

    if matmul_dtype is not None:
        image_features = image_features.astype(matmul_dtype)
        text_features = text_features.astype(matmul_dtype)

    # diag_sim hoisted out of the kernel's reduction loop (computed once per row),
    # from the same (possibly cast) values the MXU will see.
    diag = jnp.sum(image_features.astype(jnp.float32) * text_features.astype(jnp.float32),
                   axis=-1, keepdims=True)                            # (B, 1) f32

    # Pad the feature (lane) dim to a multiple of 128: zero padding does not change
    # any dot product and keeps loads lane-dense.
    Dp = _round_up(D, 128)
    if Dp != D:
        fpad = ((0, 0), (0, Dp - D))
        image_features = jnp.pad(image_features, fpad)
        text_features = jnp.pad(text_features, fpad)

    cap = _vmem_capacity_bytes()
    big_vmem = cap >= (100 << 20)        # v5e / v6e (128 MiB); v7x has 64 MiB per TC

    if block_rows is None:
        bm_t = 512
        if (not big_vmem) and B >= 16:
            # small-VMEM (v7x) parts have 2 TensorCores: keep >= 2 row blocks so the
            # "parallel" row axis can split across both cores.
            bm_t = min(bm_t, _round_up((B + 1) // 2, 8))
    else:
        bm_t = int(block_rows)
    bn_t = int(block_cols) if block_cols is not None else (1024 if big_vmem else 512)

    bm = _round_up(max(8, min(bm_t, _round_up(B, 8))), 8)
    bn = _round_up(max(8, min(bn_t, _round_up(B, 8))), 8)

    itemsize = jnp.dtype(image_features.dtype).itemsize

    def _vmem_est(bm_, bn_):
        est = 2 * (2 * bm_ + 2 * bn_) * Dp * itemsize   # double-buffered q/k tiles
        est += 14 * bm_ * bn_ * 4                       # live (bm, bn) f32/int32 temps
        est += 40 * bm_ * 4 + (2 << 20)                 # per-row refs + margin
        return est

    budget = int(0.8 * cap)
    while _vmem_est(bm, bn) > budget and bn > 128:
        bn //= 2
    while _vmem_est(bm, bn) > budget and bm > 128:
        bm //= 2

    # Pad the batch so both tile sizes divide it; padded columns are masked in-kernel,
    # padded rows are sliced off below (no full-batch single-tile fallback).
    tile_lcm = bm * bn // math.gcd(bm, bn)
    Bp = _round_up(B, tile_lcm)

    scale_arr = jnp.asarray(logit_scale, jnp.float32).reshape(1, 1)
    u_im2 = jnp.asarray(u_im, jnp.float32).reshape(B, 1)
    u_tt2 = jnp.asarray(u_tt, jnp.float32).reshape(B, 1)
    if Bp != B:
        rpad = ((0, Bp - B), (0, 0))
        image_features = jnp.pad(image_features, rpad)
        text_features = jnp.pad(text_features, rpad)
        diag = jnp.pad(diag, rpad)
        u_im2 = jnp.pad(u_im2, rpad)
        u_tt2 = jnp.pad(u_tt2, rpad)

    vmem_limit = int(min(max(_vmem_est(bm, bn), 32 << 20), budget))

    kernel = functools.partial(_sogclr_kernel, gamma=float(gamma), eps=float(eps),
                               offset=int(offset), n_total=int(B), n_padded=int(Bp))

    row_map = lambda i, j: (i, 0)
    col_map = lambda i, j: (j, 0)

    u_im_new, u_tt_new, loss_rows = pl.pallas_call(
        kernel,
        out_shape=(
            jax.ShapeDtypeStruct((Bp, 1), jnp.float32),   # u_im (new)
            jax.ShapeDtypeStruct((Bp, 1), jnp.float32),   # u_tt (new)
            jax.ShapeDtypeStruct((Bp, 1), jnp.float32),   # per-row loss_im + loss_tt
        ),
        grid_spec=pltpu.PrefetchScalarGridSpec(
            num_scalar_prefetch=0,
            grid=(Bp // bm, Bp // bn),
            in_specs=[
                pl.BlockSpec((1, 1), lambda i, j: (0, 0), memory_space=pltpu.SMEM),
                pl.BlockSpec((bm, Dp), row_map),   # image rows    (queries)
                pl.BlockSpec((bm, Dp), row_map),   # text rows     (queries)
                pl.BlockSpec((bn, Dp), col_map),   # image columns (keys)
                pl.BlockSpec((bn, Dp), col_map),   # text columns  (keys)
                pl.BlockSpec((bm, 1), row_map),    # diag_sim (hoisted)
                pl.BlockSpec((bm, 1), row_map),    # u_im (old)
                pl.BlockSpec((bm, 1), row_map),    # u_tt (old)
            ],
            out_specs=[
                pl.BlockSpec((bm, 1), row_map),
                pl.BlockSpec((bm, 1), row_map),
                pl.BlockSpec((bm, 1), row_map),
            ],
            scratch_shapes=[pltpu.VMEM((bm, 1), jnp.float32)] * 8,
        ),
        compiler_params=pltpu.CompilerParams(
            dimension_semantics=("parallel", "arbitrary"),
            vmem_limit_bytes=vmem_limit,
        ),
    )(scale_arr, image_features, text_features, image_features, text_features,
      diag, u_im2, u_tt2)

    u_im_new = u_im_new[:B]
    u_tt_new = u_tt_new[:B]
    loss_rows = loss_rows[:B]

    s = jnp.asarray(logit_scale, jnp.float32)
    loss = jnp.mean(loss_rows)
    if multiply_tau:
        loss = loss / s
        loss = loss + rho / s
        loss = loss + jnp.mean(u_im_new + u_tt_new) / 2.0 / s
    loss = loss * loss_weight
    dist_loss = jnp.float32(0.0)   # TODO(synk): distill_loss (dist_features) path not implemented
    return loss, dist_loss, (u_im_new, u_tt_new)


def _logsumexp(x, axis=-1):
    m = jnp.max(x, axis=axis, keepdims=True)
    return m + jnp.log(jnp.sum(jnp.exp(x - m), axis=axis, keepdims=True))


def sogclr_loss_ref(image_features, text_features, u_im, u_tt, logit_scale, *,
                    gamma=1.0, eps=1e-14, rho=8.0, multiply_tau=True,
                    loss_weight=1.0, offset=0):
    """Pure-JAX reference mirroring SogCLRLoss.forward (single-device path)."""
    B = image_features.shape[0]
    f32 = jnp.float32
    hp = jax.lax.Precision.HIGHEST
    img = image_features.astype(f32)
    txt = text_features.astype(f32)
    s = jnp.asarray(logit_scale, f32)

    sim_image = jnp.dot(img, txt.T, precision=hp)
    sim_text = jnp.dot(txt, img.T, precision=hp)
    diag_sim = jnp.sum(img * txt, axis=-1, keepdims=True)
    diff_im = (sim_image - diag_sim) * s
    diff_tt = (sim_text - diag_sim) * s

    mask_inv = jax.nn.one_hot(jnp.arange(B) + offset, B, dtype=f32)
    mask = 1.0 - mask_inv
    c = math.log(eps * B)
    lse_im = _logsumexp(diff_im + mask_inv * c - c) + math.log(eps)
    lse_tt = _logsumexp(diff_tt + mask_inv * c - c) + math.log(eps)

    if gamma == 1.0:
        u_im_new, u_tt_new = lse_im, lse_tt
    else:
        def mix(u_old, lse):
            bad = (u_old == 0.0) | jnp.isinf(u_old) | jnp.isnan(u_old)
            ud = u_old + math.log(1.0 - gamma) - (lse + math.log(gamma))
            u = jnp.where(ud > 0,
                          u_old + math.log(1.0 - gamma) + jnp.log(1.0 + jnp.exp(-ud)),
                          lse + math.log(gamma) + jnp.log(1.0 + jnp.exp(ud)))
            return jnp.where(bad, lse, u)
        u_im_new = mix(jnp.asarray(u_im, f32).reshape(B, 1), lse_im)
        u_tt_new = mix(jnp.asarray(u_tt, f32).reshape(B, 1), lse_tt)

    w_im = jnp.exp(diff_im - u_im_new)
    w_tt = jnp.exp(diff_tt - u_tt_new)
    loss_im = jnp.sum(diff_im * w_im * mask, axis=-1, keepdims=True) / (B - 1)
    loss_tt = jnp.sum(diff_tt * w_tt * mask, axis=-1, keepdims=True) / (B - 1)
    loss = jnp.mean(loss_im + loss_tt)
    if multiply_tau:
        loss = loss / s + rho / s + jnp.mean(u_im_new + u_tt_new) / 2.0 / s
    loss = loss * loss_weight
    return loss, jnp.float32(0.0), (u_im_new, u_tt_new)


if __name__ == "__main__":
    key = jax.random.PRNGKey(0)
    k_img, k_txt, k_u1, k_u2 = jax.random.split(key, 4)

    B, D = 64, 128   # small demo shapes: batch of 64 paired embeddings, dim 128

    image_features = jax.random.normal(k_img, (B, D), dtype=jnp.float32)
    text_features = jax.random.normal(k_txt, (B, D), dtype=jnp.float32)
    image_features = image_features / jnp.linalg.norm(image_features, axis=-1, keepdims=True)
    text_features = text_features / jnp.linalg.norm(text_features, axis=-1, keepdims=True)
    logit_scale = jnp.float32(10.0)

    # Case 1: first-epoch behaviour (gamma == 1.0, u buffers start at zero), default tiles.
    u_im0 = jnp.zeros((B, 1), jnp.float32)
    u_tt0 = jnp.zeros((B, 1), jnp.float32)
    loss1, _, (u_im1, u_tt1) = sogclr_loss(
        image_features, text_features, u_im0, u_tt0, logit_scale, gamma=1.0)
    loss1 = jax.block_until_ready(loss1)
    rl1, _, (ru_im1, ru_tt1) = sogclr_loss_ref(
        image_features, text_features, u_im0, u_tt0, logit_scale, gamma=1.0)
    assert jnp.allclose(loss1, rl1, rtol=1e-3, atol=1e-3), (loss1, rl1)
    assert jnp.allclose(u_im1, ru_im1, rtol=1e-3, atol=1e-3)
    assert jnp.allclose(u_tt1, ru_tt1, rtol=1e-3, atol=1e-3)

    # Case 2: later-epoch behaviour (gamma < 1, mixed zero / warm u entries) on a
    # tiled (4 x 2) grid to exercise both the masked (diagonal) and fast column paths.
    rows = jnp.arange(B)[:, None]
    u_im_old = jnp.where(rows % 2 == 0, 0.0,
                         jax.random.normal(k_u1, (B, 1)) - 3.0).astype(jnp.float32)
    u_tt_old = jnp.where(rows % 3 == 0, 0.0,
                         jax.random.normal(k_u2, (B, 1)) - 3.0).astype(jnp.float32)
    loss2, _, (u_im2, u_tt2) = sogclr_loss(
        image_features, text_features, u_im_old, u_tt_old, logit_scale,
        gamma=0.8, block_rows=16, block_cols=32)
    loss2 = jax.block_until_ready(loss2)
    rl2, _, (ru_im2, ru_tt2) = sogclr_loss_ref(
        image_features, text_features, u_im_old, u_tt_old, logit_scale, gamma=0.8)
    assert jnp.allclose(loss2, rl2, rtol=1e-3, atol=1e-3), (loss2, rl2)
    assert jnp.allclose(u_im2, ru_im2, rtol=1e-3, atol=1e-3)
    assert jnp.allclose(u_tt2, ru_tt2, rtol=1e-3, atol=1e-3)

    # Case 3: bf16 matmul dtype + a non-tile-divisible batch (B=56 padded to 64) to
    # exercise the padded-column masking path; reference sees the same bf16-cast values.
    Bs = 56
    img_s = image_features[:Bs].astype(jnp.bfloat16)
    txt_s = text_features[:Bs].astype(jnp.bfloat16)
    u_im_s = u_im_old[:Bs]
    u_tt_s = u_tt_old[:Bs]
    loss3, _, (u_im3, u_tt3) = sogclr_loss(
        img_s, txt_s, u_im_s, u_tt_s, logit_scale,
        gamma=0.8, block_rows=16, block_cols=32)
    loss3 = jax.block_until_ready(loss3)
    rl3, _, (ru_im3, ru_tt3) = sogclr_loss_ref(
        img_s.astype(jnp.float32), txt_s.astype(jnp.float32),
        u_im_s, u_tt_s, logit_scale, gamma=0.8)
    assert jnp.allclose(loss3, rl3, rtol=1e-3, atol=1e-3), (loss3, rl3)
    assert jnp.allclose(u_im3, ru_im3, rtol=1e-3, atol=1e-3)
    assert jnp.allclose(u_tt3, ru_tt3, rtol=1e-3, atol=1e-3)

    print("KERNEL_OK")
</pallas_src>

<mosaic_0001>
module attributes {stable_mosaic.version = 11 : i64} {
  func.func @_sogclr_kernel(%arg0: i32, %arg1: i32, %arg2: memref<1x1xf32, #tpu.memory_space<smem>>, %arg3: memref<32x128xf32, #tpu.memory_space<vmem>>, %arg4: memref<32x128xf32, #tpu.memory_space<vmem>>, %arg5: memref<64x128xf32, #tpu.memory_space<vmem>>, %arg6: memref<64x128xf32, #tpu.memory_space<vmem>>, %arg7: memref<32x1xf32, #tpu.memory_space<vmem>>, %arg8: memref<32x1xf32, #tpu.memory_space<vmem>>, %arg9: memref<32x1xf32, #tpu.memory_space<vmem>>, %arg10: memref<32x1xf32, #tpu.memory_space<vmem>>, %arg11: memref<32x1xf32, #tpu.memory_space<vmem>>, %arg12: memref<32x1xf32, #tpu.memory_space<vmem>>, %arg13: memref<32x1xf32, #tpu.memory_space<vmem>>, %arg14: memref<32x1xf32, #tpu.memory_space<vmem>>, %arg15: memref<32x1xf32, #tpu.memory_space<vmem>>, %arg16: memref<32x1xf32, #tpu.memory_space<vmem>>, %arg17: memref<32x1xf32, #tpu.memory_space<vmem>>, %arg18: memref<32x1xf32, #tpu.memory_space<vmem>>, %arg19: memref<32x1xf32, #tpu.memory_space<vmem>>, %arg20: memref<32x1xf32, #tpu.memory_space<vmem>>) attributes {dimension_semantics = [#tpu.dimension_semantics<parallel>, #tpu.dimension_semantics<arbitrary>], iteration_bounds = array<i64: 2, 1>, scalar_prefetch = 0 : i64, scratch_operands = 8 : i64, tpu.core_type = #tpu.core_type<tc>, window_params = [{transform_indices = @transform_0, window_bounds = array<i64: 1, 1>}, {transform_indices = @transform_1, window_bounds = array<i64: 32, 128>}, {transform_indices = @transform_2, window_bounds = array<i64: 32, 128>}, {transform_indices = @transform_3, window_bounds = array<i64: 64, 128>}, {transform_indices = @transform_4, window_bounds = array<i64: 64, 128>}, {transform_indices = @transform_5, window_bounds = array<i64: 32, 1>}, {transform_indices = @transform_6, window_bounds = array<i64: 32, 1>}, {transform_indices = @transform_7, window_bounds = array<i64: 32, 1>}, {transform_indices = @transform_8, window_bounds = array<i64: 32, 1>}, {transform_indices = @transform_9, window_bounds = array<i64: 32, 1>}, {transform_indices = @transform_10, window_bounds = array<i64: 32, 1>}]} {
    %c0_i32 = arith.constant 0 : i32
    %0 = arith.cmpi eq, %arg1, %c0_i32 : i32
    %1 = arith.extui %0 : i1 to i32
    %c0_i32_0 = arith.constant 0 : i32
    %2 = arith.cmpi ne, %1, %c0_i32_0 : i32
    scf.if %2 {
      %cst_21 = arith.constant -1.000000e+30 : f32
      %35 = vector.broadcast %cst_21 : f32 to vector<32x1xf32>
      %c0_22 = arith.constant 0 : index
      %c0_23 = arith.constant 0 : index
      %36 = vector.load %arg13[%c0_22, %c0_23] : memref<32x1xf32, #tpu.memory_space<vmem>>, vector<32x1xf32>
      tpu.vector_store %arg13[%c0_22, %c0_23], %35 {strides = array<i32>} : memref<32x1xf32, #tpu.memory_space<vmem>>, vector<32x1xf32>,
      %cst_24 = arith.constant -1.000000e+30 : f32
      %37 = vector.broadcast %cst_24 : f32 to vector<32x1xf32>
      %c0_25 = arith.constant 0 : index
      %c0_26 = arith.constant 0 : index
      %38 = vector.load %arg17[%c0_25, %c0_26] : memref<32x1xf32, #tpu.memory_space<vmem>>, vector<32x1xf32>
      tpu.vector_store %arg17[%c0_25, %c0_26], %37 {strides = array<i32>} : memref<32x1xf32, #tpu.memory_space<vmem>>, vector<32x1xf32>,
      %cst_27 = arith.constant -1.000000e+30 : f32
      %39 = vector.broadcast %cst_27 : f32 to vector<32x1xf32>
      %c0_28 = arith.constant 0 : index
      %c0_29 = arith.constant 0 : index
      %40 = vector.load %arg16[%c0_28, %c0_29] : memref<32x1xf32, #tpu.memory_space<vmem>>, vector<32x1xf32>
      tpu.vector_store %arg16[%c0_28, %c0_29], %39 {strides = array<i32>} : memref<32x1xf32, #tpu.memory_space<vmem>>, vector<32x1xf32>,
      %cst_30 = arith.constant -1.000000e+30 : f32
      %41 = vector.broadcast %cst_30 : f32 to vector<32x1xf32>
      %c0_31 = arith.constant 0 : index
      %c0_32 = arith.constant 0 : index
      %42 = vector.load %arg20[%c0_31, %c0_32] : memref<32x1xf32, #tpu.memory_space<vmem>>, vector<32x1xf32>
      tpu.vector_store %arg20[%c0_31, %c0_32], %41 {strides = array<i32>} : memref<32x1xf32, #tpu.memory_space<vmem>>, vector<32x1xf32>,
      %cst_33 = arith.constant 0.000000e+00 : f32
      %43 = vector.broadcast %cst_33 : f32 to vector<32x1xf32>
      %c0_34 = arith.constant 0 : index
      %c0_35 = arith.constant 0 : index
      %44 = vector.load %arg14[%c0_34, %c0_35] : memref<32x1xf32, #tpu.memory_space<vmem>>, vector<32x1xf32>
      tpu.vector_store %arg14[%c0_34, %c0_35], %43 {strides = array<i32>} : memref<32x1xf32, #tpu.memory_space<vmem>>, vector<32x1xf32>,
      %cst_36 = arith.constant 0.000000e+00 : f32
      %45 = vector.broadcast %cst_36 : f32 to vector<32x1xf32>
      %c0_37 = arith.constant 0 : index
      %c0_38 = arith.constant 0 : index
      %46 = vector.load %arg18[%c0_37, %c0_38] : memref<32x1xf32, #tpu.memory_space<vmem>>, vector<32x1xf32>
      tpu.vector_store %arg18[%c0_37, %c0_38], %45 {strides = array<i32>} : memref<32x1xf32, #tpu.memory_space<vmem>>, vector<32x1xf32>,
      %cst_39 = arith.constant 0.000000e+00 : f32
      %47 = vector.broadcast %cst_39 : f32 to vector<32x1xf32>
      %c0_40 = arith.constant 0 : index
      %c0_41 = arith.constant 0 : index
      %48 = vector.load %arg15[%c0_40, %c0_41] : memref<32x1xf32, #tpu.memory_space<vmem>>, vector<32x1xf32>
      tpu.vector_store %arg15[%c0_40, %c0_41], %47 {strides = array<i32>} : memref<32x1xf32, #tpu.memory_space<vmem>>, vector<32x1xf32>,
      %cst_42 = arith.constant 0.000000e+00 : f32
      %49 = vector.broadcast %cst_42 : f32 to vector<32x1xf32>
      %c0_43 = arith.constant 0 : index
      %c0_44 = arith.constant 0 : index
      %50 = vector.load %arg19[%c0_43, %c0_44] : memref<32x1xf32, #tpu.memory_space<vmem>>, vector<32x1xf32>
      tpu.vector_store %arg19[%c0_43, %c0_44], %49 {strides = array<i32>} : memref<32x1xf32, #tpu.memory_space<vmem>>, vector<32x1xf32>,
    } else {
    }
    %c0 = arith.constant 0 : index
    %c0_1 = arith.constant 0 : index
    %3 = memref.load %arg2[%c0, %c0_1] : memref<1x1xf32, #tpu.memory_space<smem>>
    %c0_2 = arith.constant 0 : index
    %c0_3 = arith.constant 0 : index
    %4 = vector.load %arg7[%c0_2, %c0_3] : memref<32x1xf32, #tpu.memory_space<vmem>>, vector<32x1xf32>
    %c0_4 = arith.constant 0 : index
    %c0_5 = arith.constant 0 : index
    %5 = vector.load %arg3[%c0_4, %c0_5] : memref<32x128xf32, #tpu.memory_space<vmem>>, vector<32x128xf32>
    %c0_6 = arith.constant 0 : index
    %c0_7 = arith.constant 0 : index
    %6 = vector.load %arg6[%c0_6, %c0_7] : memref<64x128xf32, #tpu.memory_space<vmem>>, vector<64x128xf32>
    %cst = arith.constant dense<0.000000e+00> : vector<32x64xf32>
    %7 = tpu.matmul %5, %6, %cst {dimension_numbers = #tpu.dot_dimension_numbers<[1], [1], [0], [0], [0, 0, 1, 0], [], []>} : vector<32x128xf32>, vector<64x128xf32>, vector<32x64xf32> -> vector<32x64xf32>
    %c0_8 = arith.constant 0 : index
    %c0_9 = arith.constant 0 : index
    %8 = vector.load %arg4[%c0_8, %c0_9] : memref<32x128xf32, #tpu.memory_space<vmem>>, vector<32x128xf32>
    %c0_10 = arith.constant 0 : index
    %c0_11 = arith.constant 0 : index
    %9 = vector.load %arg5[%c0_10, %c0_11] : memref<64x128xf32, #tpu.memory_space<vmem>>, vector<64x128xf32>
    %cst_12 = arith.constant dense<0.000000e+00> : vector<32x64xf32>
    %10 = tpu.matmul %8, %9, %cst_12 {dimension_numbers = #tpu.dot_dimension_numbers<[1], [1], [0], [0], [0, 0, 1, 0], [], []>} : vector<32x128xf32>, vector<64x128xf32>, vector<32x64xf32> -> vector<32x64xf32>
    %11 = vector.broadcast %4 : vector<32x1xf32> to vector<32x64xf32>
    %12 = arith.subf %7, %11 : vector<32x64xf32>
    %13 = vector.broadcast %3 : f32 to vector<32x64xf32>
    %14 = arith.mulf %12, %13 : vector<32x64xf32>
    %15 = vector.broadcast %4 : vector<32x1xf32> to vector<32x64xf32>
    %16 = arith.subf %10, %15 : vector<32x64xf32>
    %17 = vector.broadcast %3 : f32 to vector<32x64xf32>
    %18 = arith.mulf %16, %17 : vector<32x64xf32>
    %c32_i32 = arith.constant 32 : i32
    %19 = arith.muli %arg0, %c32_i32 : i32
    %c0_i32_13 = arith.constant 0 : i32
    %20 = arith.addi %19, %c0_i32_13 : i32
    %c64_i32 = arith.constant 64 : i32
    %21 = arith.muli %arg1, %c64_i32 : i32
    %c64_i32_14 = arith.constant 64 : i32
    %22 = arith.addi %21, %c64_i32_14 : i32
    %23 = arith.cmpi slt, %20, %22 : i32
    %c32_i32_15 = arith.constant 32 : i32
    %24 = arith.addi %20, %c32_i32_15 : i32
    %25 = arith.cmpi slt, %21, %24 : i32
    %26 = arith.andi %23, %25 : i1
    %27 = arith.extui %26 : i1 to i32
    %cst_16 = arith.constant -1.000000e+30 : f32
    %c0_i32_17 = arith.constant 0 : i32
    %28 = arith.cmpi ne, %27, %c0_i32_17 : i32
    scf.if %28 {
      %35 = tpu.iota {dimensions = array<i32: 0>} : vector<32x64xi32>
      %36 = vector.broadcast %20 : i32 to vector<32x64xi32>
      %37 = arith.addi %35, %36 : vector<32x64xi32>
      %38 = tpu.iota {dimensions = array<i32: 1>} : vector<32x64xi32>
      %39 = vector.broadcast %21 : i32 to vector<32x64xi32>
      %40 = arith.addi %38, %39 : vector<32x64xi32>
      %41 = arith.cmpi eq, %37, %40 : vector<32x64xi32>
      %c64_i32_21 = arith.constant 64 : i32
      %42 = vector.broadcast %c64_i32_21 : i32 to vector<32x64xi32>
      %43 = arith.cmpi sge, %40, %42 : vector<32x64xi32>
      %44 = arith.ori %41, %43 : vector<32x64xi1>
      %cst_22 = arith.constant 1.000000e+00 : f32
      %cst_23 = arith.constant 0.000000e+00 : f32
      %45 = vector.broadcast %cst_22 : f32 to vector<32x64xf32>
      %46 = vector.broadcast %cst_23 : f32 to vector<32x64xf32>
      %47 = arith.select %41, %45, %46 : vector<32x64xi1>, vector<32x64xf32>
      %cst_24 = arith.constant dense<0.000000e+00> : vector<32xf32>
      %48 = vector.multi_reduction <add>, %47, %cst_24 [1] : vector<32x64xf32> to vector<32xf32>
      %49 = vector.shape_cast %48 : vector<32xf32> to vector<32x1xf32>
      %cst_25 = arith.constant 0.000000e+00 : f32
      %50 = vector.broadcast %cst_25 : f32 to vector<32x1xf32>
      %51 = arith.cmpf ogt, %49, %50 : vector<32x1xf32>
      %cst_26 = arith.constant 0.000000e+00 : f32
      %52 = vector.broadcast %cst_26 : f32 to vector<32x64xf32>
      %53 = arith.select %41, %14, %52 : vector<32x64xi1>, vector<32x64xf32>
      %cst_27 = arith.constant dense<0.000000e+00> : vector<32xf32>
      %54 = vector.multi_reduction <add>, %53, %cst_27 [1] : vector<32x64xf32> to vector<32xf32>
      %55 = vector.shape_cast %54 : vector<32xf32> to vector<32x1xf32>
      %c0_28 = arith.constant 0 : index
      %c0_29 = arith.constant 0 : index
      %56 = vector.load %arg16[%c0_28, %c0_29] : memref<32x1xf32, #tpu.memory_space<vmem>>, vector<32x1xf32>
      %57 = arith.select %51, %55, %56 : vector<32x1xi1>, vector<32x1xf32>
      %c0_30 = arith.constant 0 : index
      %c0_31 = arith.constant 0 : index
      %58 = vector.load %arg16[%c0_30, %c0_31] : memref<32x1xf32, #tpu.memory_space<vmem>>, vector<32x1xf32>
      tpu.vector_store %arg16[%c0_30, %c0_31], %57 {strides = array<i32>} : memref<32x1xf32, #tpu.memory_space<vmem>>, vector<32x1xf32>,
      %cst_32 = arith.constant 0.000000e+00 : f32
      %59 = vector.broadcast %cst_32 : f32 to vector<32x64xf32>
      %60 = arith.select %41, %18, %59 : vector<32x64xi1>, vector<32x64xf32>
      %cst_33 = arith.constant dense<0.000000e+00> : vector<32xf32>
      %61 = vector.multi_reduction <add>, %60, %cst_33 [1] : vector<32x64xf32> to vector<32xf32>
      %62 = vector.shape_cast %61 : vector<32xf32> to vector<32x1xf32>
      %c0_34 = arith.constant 0 : index
      %c0_35 = arith.constant 0 : index
      %63 = vector.load %arg20[%c0_34, %c0_35] : memref<32x1xf32, #tpu.memory_space<vmem>>, vector<32x1xf32>
      %64 = arith.select %51, %62, %63 : vector<32x1xi1>, vector<32x1xf32>
      %c0_36 = arith.constant 0 : index
      %c0_37 = arith.constant 0 : index
      %65 = vector.load %arg20[%c0_36, %c0_37] : memref<32x1xf32, #tpu.memory_space<vmem>>, vector<32x1xf32>
      tpu.vector_store %arg20[%c0_36, %c0_37], %64 {strides = array<i32>} : memref<32x1xf32, #tpu.memory_space<vmem>>, vector<32x1xf32>,
      %66 = vector.broadcast %cst_16 : f32 to vector<32x64xf32>
      %67 = arith.select %44, %66, %14 : vector<32x64xi1>, vector<32x64xf32>
      %c0_38 = arith.constant 0 : index
      %c0_39 = arith.constant 0 : index
      %68 = vector.load %arg13[%c0_38, %c0_39] : memref<32x1xf32, #tpu.memory_space<vmem>>, vector<32x1xf32>
      %cst_40 = arith.constant dense<0xFF800000> : vector<32xf32>
      %69 = vector.multi_reduction <maximumf>, %67, %cst_40 [1] : vector<32x64xf32> to vector<32xf32>
      %70 = vector.shape_cast %69 : vector<32xf32> to vector<32x1xf32>
      %71 = arith.maximumf %68, %70 : vector<32x1xf32>
      %72 = arith.subf %68, %71 : vector<32x1xf32>
      %73 = math.exp %72 : vector<32x1xf32>
      %74 = vector.broadcast %71 : vector<32x1xf32> to vector<32x64xf32>
      %75 = arith.subf %67, %74 : vector<32x64xf32>
      %76 = math.exp %75 : vector<32x64xf32>
      %c0_41 = arith.constant 0 : index
      %c0_42 = arith.constant 0 : index
      %77 = vector.load %arg14[%c0_41, %c0_42] : memref<32x1xf32, #tpu.memory_space<vmem>>, vector<32x1xf32>
      %78 = arith.mulf %77, %73 : vector<32x1xf32>
      %cst_43 = arith.constant dense<0.000000e+00> : vector<32xf32>
      %79 = vector.multi_reduction <add>, %76, %cst_43 [1] : vector<32x64xf32> to vector<32xf32>
      %80 = vector.shape_cast %79 : vector<32xf32> to vector<32x1xf32>
      %81 = arith.addf %78, %80 : vector<32x1xf32>
      %c0_44 = arith.constant 0 : index
      %c0_45 = arith.constant 0 : index
      %82 = vector.load %arg14[%c0_44, %c0_45] : memref<32x1xf32, #tpu.memory_space<vmem>>, vector<32x1xf32>
      tpu.vector_store %arg14[%c0_44, %c0_45], %81 {strides = array<i32>} : memref<32x1xf32, #tpu.memory_space<vmem>>, vector<32x1xf32>,
      %c0_46 = arith.constant 0 : index
      %c0_47 = arith.constant 0 : index
      %83 = vector.load %arg15[%c0_46, %c0_47] : memref<32x1xf32, #tpu.memory_space<vmem>>, vector<32x1xf32>
      %84 = arith.mulf %83, %73 : vector<32x1xf32>
      %85 = arith.mulf %14, %76 : vector<32x64xf32>
      %cst_48 = arith.constant dense<0.000000e+00> : vector<32xf32>
      %86 = vector.multi_reduction <add>, %85, %cst_48 [1] : vector<32x64xf32> to vector<32xf32>
      %87 = vector.shape_cast %86 : vector<32xf32> to vector<32x1xf32>
      %88 = arith.addf %84, %87 : vector<32x1xf32>
      %c0_49 = arith.constant 0 : index
      %c0_50 = arith.constant 0 : index
      %89 = vector.load %arg15[%c0_49, %c0_50] : memref<32x1xf32, #tpu.memory_space<vmem>>, vector<32x1xf32>
      tpu.vector_store %arg15[%c0_49, %c0_50], %88 {strides = array<i32>} : memref<32x1xf32, #tpu.memory_space<vmem>>, vector<32x1xf32>,
      %c0_51 = arith.constant 0 : index
      %c0_52 = arith.constant 0 : index
      %90 = vector.load %arg13[%c0_51, %c0_52] : memref<32x1xf32, #tpu.memory_space<vmem>>, vector<32x1xf32>
      tpu.vector_store %arg13[%c0_51, %c0_52], %71 {strides = array<i32>} : memref<32x1xf32, #tpu.memory_space<vmem>>, vector<32x1xf32>,
      %91 = vector.broadcast %cst_16 : f32 to vector<32x64xf32>
      %92 = arith.select %44, %91, %18 : vector<32x64xi1>, vector<32x64xf32>
      %c0_53 = arith.constant 0 : index
      %c0_54 = arith.constant 0 : index
      %93 = vector.load %arg17[%c0_53, %c0_54] : memref<32x1xf32, #tpu.memory_space<vmem>>, vector<32x1xf32>
      %cst_55 = arith.constant dense<0xFF800000> : vector<32xf32>
      %94 = vector.multi_reduction <maximumf>, %92, %cst_55 [1] : vector<32x64xf32> to vector<32xf32>
      %95 = vector.shape_cast %94 : vector<32xf32> to vector<32x1xf32>
      %96 = arith.maximumf %93, %95 : vector<32x1xf32>
      %97 = arith.subf %93, %96 : vector<32x1xf32>
      %98 = math.exp %97 : vector<32x1xf32>
      %99 = vector.broadcast %96 : vector<32x1xf32> to vector<32x64xf32>
      %100 = arith.subf %92, %99 : vector<32x64xf32>
      %101 = math.exp %100 : vector<32x64xf32>
      %c0_56 = arith.constant 0 : index
      %c0_57 = arith.constant 0 : index
      %102 = vector.load %arg18[%c0_56, %c0_57] : memref<32x1xf32, #tpu.memory_space<vmem>>, vector<32x1xf32>
      %103 = arith.mulf %102, %98 : vector<32x1xf32>
      %cst_58 = arith.constant dense<0.000000e+00> : vector<32xf32>
      %104 = vector.multi_reduction <add>, %101, %cst_58 [1] : vector<32x64xf32> to vector<32xf32>
      %105 = vector.shape_cast %104 : vector<32xf32> to vector<32x1xf32>
      %106 = arith.addf %103, %105 : vector<32x1xf32>
      %c0_59 = arith.constant 0 : index
      %c0_60 = arith.constant 0 : index
      %107 = vector.load %arg18[%c0_59, %c0_60] : memref<32x1xf32, #tpu.memory_space<vmem>>, vector<32x1xf32>
      tpu.vector_store %arg18[%c0_59, %c0_60], %106 {strides = array<i32>} : memref<32x1xf32, #tpu.memory_space<vmem>>, vector<32x1xf32>,
      %c0_61 = arith.constant 0 : index
      %c0_62 = arith.constant 0 : index
      %108 = vector.load %arg19[%c0_61, %c0_62] : memref<32x1xf32, #tpu.memory_space<vmem>>, vector<32x1xf32>
      %109 = arith.mulf %108, %98 : vector<32x1xf32>
      %110 = arith.mulf %18, %101 : vector<32x64xf32>
      %cst_63 = arith.constant dense<0.000000e+00> : vector<32xf32>
      %111 = vector.multi_reduction <add>, %110, %cst_63 [1] : vector<32x64xf32> to vector<32xf32>
      %112 = vector.shape_cast %111 : vector<32xf32> to vector<32x1xf32>
      %113 = arith.addf %109, %112 : vector<32x1xf32>
      %c0_64 = arith.constant 0 : index
      %c0_65 = arith.constant 0 : index
      %114 = vector.load %arg19[%c0_64, %c0_65] : memref<32x1xf32, #tpu.memory_space<vmem>>, vector<32x1xf32>
      tpu.vector_store %arg19[%c0_64, %c0_65], %113 {strides = array<i32>} : memref<32x1xf32, #tpu.memory_space<vmem>>, vector<32x1xf32>,
      %c0_66 = arith.constant 0 : index
      %c0_67 = arith.constant 0 : index
      %115 = vector.load %arg17[%c0_66, %c0_67] : memref<32x1xf32, #tpu.memory_space<vmem>>, vector<32x1xf32>
      tpu.vector_store %arg17[%c0_66, %c0_67], %96 {strides = array<i32>} : memref<32x1xf32, #tpu.memory_space<vmem>>, vector<32x1xf32>,
    } else {
    }
    %true = arith.constant true
    %29 = arith.xori %26, %true : i1
    %30 = arith.extui %29 : i1 to i32
    %c0_i32_18 = arith.constant 0 : i32
    %31 = arith.cmpi ne, %30, %c0_i32_18 : i32
    scf.if %31 {
      %c0_21 = arith.constant 0 : index
      %c0_22 = arith.constant 0 : index
      %35 = vector.load %arg13[%c0_21, %c0_22] : memref<32x1xf32, #tpu.memory_space<vmem>>, vector<32x1xf32>
      %cst_23 = arith.constant dense<0xFF800000> : vector<32xf32>
      %36 = vector.multi_reduction <maximumf>, %14, %cst_23 [1] : vector<32x64xf32> to vector<32xf32>
      %37 = vector.shape_cast %36 : vector<32xf32> to vector<32x1xf32>
      %38 = arith.maximumf %35, %37 : vector<32x1xf32>
      %39 = arith.subf %35, %38 : vector<32x1xf32>
      %40 = math.exp %39 : vector<32x1xf32>
      %41 = vector.broadcast %38 : vector<32x1xf32> to vector<32x64xf32>
      %42 = arith.subf %14, %41 : vector<32x64xf32>
      %43 = math.exp %42 : vector<32x64xf32>
      %c0_24 = arith.constant 0 : index
      %c0_25 = arith.constant 0 : index
      %44 = vector.load %arg14[%c0_24, %c0_25] : memref<32x1xf32, #tpu.memory_space<vmem>>, vector<32x1xf32>
      %45 = arith.mulf %44, %40 : vector<32x1xf32>
      %cst_26 = arith.constant dense<0.000000e+00> : vector<32xf32>
      %46 = vector.multi_reduction <add>, %43, %cst_26 [1] : vector<32x64xf32> to vector<32xf32>
      %47 = vector.shape_cast %46 : vector<32xf32> to vector<32x1xf32>
      %48 = arith.addf %45, %47 : vector<32x1xf32>
      %c0_27 = arith.constant 0 : index
      %c0_28 = arith.constant 0 : index
      %49 = vector.load %arg14[%c0_27, %c0_28] : memref<32x1xf32, #tpu.memory_space<vmem>>, vector<32x1xf32>
      tpu.vector_store %arg14[%c0_27, %c0_28], %48 {strides = array<i32>} : memref<32x1xf32, #tpu.memory_space<vmem>>, vector<32x1xf32>,
      %c0_29 = arith.constant 0 : index
      %c0_30 = arith.constant 0 : index
      %50 = vector.load %arg15[%c0_29, %c0_30] : memref<32x1xf32, #tpu.memory_space<vmem>>, vector<32x1xf32>
      %51 = arith.mulf %50, %40 : vector<32x1xf32>
      %52 = arith.mulf %14, %43 : vector<32x64xf32>
      %cst_31 = arith.constant dense<0.000000e+00> : vector<32xf32>
      %53 = vector.multi_reduction <add>, %52, %cst_31 [1] : vector<32x64xf32> to vector<32xf32>
      %54 = vector.shape_cast %53 : vector<32xf32> to vector<32x1xf32>
      %55 = arith.addf %51, %54 : vector<32x1xf32>
      %c0_32 = arith.constant 0 : index
      %c0_33 = arith.constant 0 : index
      %56 = vector.load %arg15[%c0_32, %c0_33] : memref<32x1xf32, #tpu.memory_space<vmem>>, vector<32x1xf32>
      tpu.vector_store %arg15[%c0_32, %c0_33], %55 {strides = array<i32>} : memref<32x1xf32, #tpu.memory_space<vmem>>, vector<32x1xf32>,
      %c0_34 = arith.constant 0 : index
      %c0_35 = arith.constant 0 : index
      %57 = vector.load %arg13[%c0_34, %c0_35] : memref<32x1xf32, #tpu.memory_space<vmem>>, vector<32x1xf32>
      tpu.vector_store %arg13[%c0_34, %c0_35], %38 {strides = array<i32>} : memref<32x1xf32, #tpu.memory_space<vmem>>, vector<32x1xf32>,
      %c0_36 = arith.constant 0 : index
      %c0_37 = arith.constant 0 : index
      %58 = vector.load %arg17[%c0_36, %c0_37] : memref<32x1xf32, #tpu.memory_space<vmem>>, vector<32x1xf32>
      %cst_38 = arith.constant dense<0xFF800000> : vector<32xf32>
      %59 = vector.multi_reduction <maximumf>, %18, %cst_38 [1] : vector<32x64xf32> to vector<32xf32>
      %60 = vector.shape_cast %59 : vector<32xf32> to vector<32x1xf32>
      %61 = arith.maximumf %58, %60 : vector<32x1xf32>
      %62 = arith.subf %58, %61 : vector<32x1xf32>
      %63 = math.exp %62 : vector<32x1xf32>
      %64 = vector.broadcast %61 : vector<32x1xf32> to vector<32x64xf32>
      %65 = arith.subf %18, %64 : vector<32x64xf32>
      %66 = math.exp %65 : vector<32x64xf32>
      %c0_39 = arith.constant 0 : index
      %c0_40 = arith.constant 0 : index
      %67 = vector.load %arg18[%c0_39, %c0_40] : memref<32x1xf32, #tpu.memory_space<vmem>>, vector<32x1xf32>
      %68 = arith.mulf %67, %63 : vector<32x1xf32>
      %cst_41 = arith.constant dense<0.000000e+00> : vector<32xf32>
      %69 = vector.multi_reduction <add>, %66, %cst_41 [1] : vector<32x64xf32> to vector<32xf32>
      %70 = vector.shape_cast %69 : vector<32xf32> to vector<32x1xf32>
      %71 = arith.addf %68, %70 : vector<32x1xf32>
      %c0_42 = arith.constant 0 : index
      %c0_43 = arith.constant 0 : index
      %72 = vector.load %arg18[%c0_42, %c0_43] : memref<32x1xf32, #tpu.memory_space<vmem>>, vector<32x1xf32>
      tpu.vector_store %arg18[%c0_42, %c0_43], %71 {strides = array<i32>} : memref<32x1xf32, #tpu.memory_space<vmem>>, vector<32x1xf32>,
      %c0_44 = arith.constant 0 : index
      %c0_45 = arith.constant 0 : index
      %73 = vector.load %arg19[%c0_44, %c0_45] : memref<32x1xf32, #tpu.memory_space<vmem>>, vector<32x1xf32>
      %74 = arith.mulf %73, %63 : vector<32x1xf32>
      %75 = arith.mulf %18, %66 : vector<32x64xf32>
      %cst_46 = arith.constant dense<0.000000e+00> : vector<32xf32>
      %76 = vector.multi_reduction <add>, %75, %cst_46 [1] : vector<32x64xf32> to vector<32xf32>
      %77 = vector.shape_cast %76 : vector<32xf32> to vector<32x1xf32>
      %78 = arith.addf %74, %77 : vector<32x1xf32>
      %c0_47 = arith.constant 0 : index
      %c0_48 = arith.constant 0 : index
      %79 = vector.load %arg19[%c0_47, %c0_48] : memref<32x1xf32, #tpu.memory_space<vmem>>, vector<32x1xf32>
      tpu.vector_store %arg19[%c0_47, %c0_48], %78 {strides = array<i32>} : memref<32x1xf32, #tpu.memory_space<vmem>>, vector<32x1xf32>,
      %c0_49 = arith.constant 0 : index
      %c0_50 = arith.constant 0 : index
      %80 = vector.load %arg17[%c0_49, %c0_50] : memref<32x1xf32, #tpu.memory_space<vmem>>, vector<32x1xf32>
      tpu.vector_store %arg17[%c0_49, %c0_50], %61 {strides = array<i32>} : memref<32x1xf32, #tpu.memory_space<vmem>>, vector<32x1xf32>,
    } else {
    }
    %c0_i32_19 = arith.constant 0 : i32
    %32 = arith.cmpi eq, %arg1, %c0_i32_19 : i32
    %33 = arith.extui %32 : i1 to i32
    %c0_i32_20 = arith.constant 0 : i32
    %34 = arith.cmpi ne, %33, %c0_i32_20 : i32
    scf.if %34 {
      %c0_21 = arith.constant 0 : index
      %c0_22 = arith.constant 0 : index
      %35 = vector.load %arg13[%c0_21, %c0_22] : memref<32x1xf32, #tpu.memory_space<vmem>>, vector<32x1xf32>
      %cst_23 = arith.constant -28.0773087 : f32
      %36 = vector.broadcast %cst_23 : f32 to vector<32x1xf32>
      %37 = arith.subf %35, %36 : vector<32x1xf32>
      %c0_24 = arith.constant 0 : index
      %c0_25 = arith.constant 0 : index
      %38 = vector.load %arg16[%c0_24, %c0_25] : memref<32x1xf32, #tpu.memory_space<vmem>>, vector<32x1xf32>
      %39 = arith.maximumf %37, %38 : vector<32x1xf32>
      %c0_26 = arith.constant 0 : index
      %c0_27 = arith.constant 0 : index
      %40 = vector.load %arg14[%c0_26, %c0_27] : memref<32x1xf32, #tpu.memory_space<vmem>>, vector<32x1xf32>
      %41 = arith.subf %37, %39 : vector<32x1xf32>
      %42 = math.exp %41 : vector<32x1xf32>
      %43 = arith.mulf %40, %42 : vector<32x1xf32>
      %44 = arith.subf %38, %39 : vector<32x1xf32>
      %45 = math.exp %44 : vector<32x1xf32>
      %46 = arith.addf %43, %45 : vector<32x1xf32>
      %47 = math.log %46 : vector<32x1xf32>
      %48 = arith.addf %39, %47 : vector<32x1xf32>
      %cst_28 = arith.constant -32.2361908 : f32
      %49 = vector.broadcast %cst_28 : f32 to vector<32x1xf32>
      %50 = arith.addf %48, %49 : vector<32x1xf32>
      %c0_29 = arith.constant 0 : index
      %c0_30 = arith.constant 0 : index
      %51 = vector.load %arg17[%c0_29, %c0_30] : memref<32x1xf32, #tpu.memory_space<vmem>>, vector<32x1xf32>
      %cst_31 = arith.constant -28.0773087 : f32
      %52 = vector.broadcast %cst_31 : f32 to vector<32x1xf32>
      %53 = arith.subf %51, %52 : vector<32x1xf32>
      %c0_32 = arith.constant 0 : index
      %c0_33 = arith.constant 0 : index
      %54 = vector.load %arg20[%c0_32, %c0_33] : memref<32x1xf32, #tpu.memory_space<vmem>>, vector<32x1xf32>
      %55 = arith.maximumf %53, %54 : vector<32x1xf32>
      %c0_34 = arith.constant 0 : index
      %c0_35 = arith.constant 0 : index
      %56 = vector.load %arg18[%c0_34, %c0_35] : memref<32x1xf32, #tpu.memory_space<vmem>>, vector<32x1xf32>
      %57 = arith.subf %53, %55 : vector<32x1xf32>
      %58 = math.exp %57 : vector<32x1xf32>
      %59 = arith.mulf %56, %58 : vector<32x1xf32>
      %60 = arith.subf %54, %55 : vector<32x1xf32>
      %61 = math.exp %60 : vector<32x1xf32>
      %62 = arith.addf %59, %61 : vector<32x1xf32>
      %63 = math.log %62 : vector<32x1xf32>
      %64 = arith.addf %55, %63 : vector<32x1xf32>
      %cst_36 = arith.constant -32.2361908 : f32
      %65 = vector.broadcast %cst_36 : f32 to vector<32x1xf32>
      %66 = arith.addf %64, %65 : vector<32x1xf32>
      %c0_37 = arith.constant 0 : index
      %c0_38 = arith.constant 0 : index
      %67 = vector.load %arg15[%c0_37, %c0_38] : memref<32x1xf32, #tpu.memory_space<vmem>>, vector<32x1xf32>
      %c0_39 = arith.constant 0 : index
      %c0_40 = arith.constant 0 : index
      %68 = vector.load %arg13[%c0_39, %c0_40] : memref<32x1xf32, #tpu.memory_space<vmem>>, vector<32x1xf32>
      %69 = arith.subf %68, %50 : vector<32x1xf32>
      %70 = math.exp %69 : vector<32x1xf32>
      %71 = arith.mulf %67, %70 : vector<32x1xf32>
      %cst_41 = arith.constant 0.0158730168 : f32
      %72 = vector.broadcast %cst_41 : f32 to vector<32x1xf32>
      %73 = arith.mulf %71, %72 : vector<32x1xf32>
      %c0_42 = arith.constant 0 : index
      %c0_43 = arith.constant 0 : index
      %74 = vector.load %arg19[%c0_42, %c0_43] : memref<32x1xf32, #tpu.memory_space<vmem>>, vector<32x1xf32>
      %c0_44 = arith.constant 0 : index
      %c0_45 = arith.constant 0 : index
      %75 = vector.load %arg17[%c0_44, %c0_45] : memref<32x1xf32, #tpu.memory_space<vmem>>, vector<32x1xf32>
      %76 = arith.subf %75, %66 : vector<32x1xf32>
      %77 = math.exp %76 : vector<32x1xf32>
      %78 = arith.mulf %74, %77 : vector<32x1xf32>
      %cst_46 = arith.constant 0.0158730168 : f32
      %79 = vector.broadcast %cst_46 : f32 to vector<32x1xf32>
      %80 = arith.mulf %78, %79 : vector<32x1xf32>
      %c0_47 = arith.constant 0 : index
      %c0_48 = arith.constant 0 : index
      %81 = vector.load %arg10[%c0_47, %c0_48] : memref<32x1xf32, #tpu.memory_space<vmem>>, vector<32x1xf32>
      tpu.vector_store %arg10[%c0_47, %c0_48], %50 {strides = array<i32>} : memref<32x1xf32, #tpu.memory_space<vmem>>, vector<32x1xf32>,
      %c0_49 = arith.constant 0 : index
      %c0_50 = arith.constant 0 : index
      %82 = vector.load %arg11[%c0_49, %c0_50] : memref<32x1xf32, #tpu.memory_space<vmem>>, vector<32x1xf32>
      tpu.vector_store %arg11[%c0_49, %c0_50], %66 {strides = array<i32>} : memref<32x1xf32, #tpu.memory_space<vmem>>, vector<32x1xf32>,
      %83 = arith.addf %73, %80 : vector<32x1xf32>
      %c0_51 = arith.constant 0 : index
      %c0_52 = arith.constant 0 : index
      %84 = vector.load %arg12[%c0_51, %c0_52] : memref<32x1xf32, #tpu.memory_space<vmem>>, vector<32x1xf32>
      tpu.vector_store %arg12[%c0_51, %c0_52], %83 {strides = array<i32>} : memref<32x1xf32, #tpu.memory_space<vmem>>, vector<32x1xf32>,
    } else {
    }
    return
  }
  func.func @transform_0(%arg0: i32, %arg1: i32) -> (i32, i32) {
    %c0_i32 = arith.constant 0 : i32
    %c0_i32_0 = arith.constant 0 : i32
    %c0_i32_1 = arith.constant 0 : i32
    return %c0_i32, %c0_i32_0 : i32, i32
  }
  func.func @transform_1(%arg0: i32, %arg1: i32) -> (i32, i32) {
    %c0_i32 = arith.constant 0 : i32
    %c0_i32_0 = arith.constant 0 : i32
    return %arg0, %c0_i32 : i32, i32
  }
  func.func @transform_2(%arg0: i32, %arg1: i32) -> (i32, i32) {
    %c0_i32 = arith.constant 0 : i32
    %c0_i32_0 = arith.constant 0 : i32
    return %arg0, %c0_i32 : i32, i32
  }
  func.func @transform_3(%arg0: i32, %arg1: i32) -> (i32, i32) {
    %c0_i32 = arith.constant 0 : i32
    %c0_i32_0 = arith.constant 0 : i32
    return %arg1, %c0_i32 : i32, i32
  }
  func.func @transform_4(%arg0: i32, %arg1: i32) -> (i32, i32) {
    %c0_i32 = arith.constant 0 : i32
    %c0_i32_0 = arith.constant 0 : i32
    return %arg1, %c0_i32 : i32, i32
  }
  func.func @transform_5(%arg0: i32, %arg1: i32) -> (i32, i32) {
    %c0_i32 = arith.constant 0 : i32
    %c0_i32_0 = arith.constant 0 : i32
    return %arg0, %c0_i32 : i32, i32
  }
  func.func @transform_6(%arg0: i32, %arg1: i32) -> (i32, i32) {
    %c0_i32 = arith.constant 0 : i32
    %c0_i32_0 = arith.constant 0 : i32
    return %arg0, %c0_i32 : i32, i32
  }
  func.func @transform_7(%arg0: i32, %arg1: i32) -> (i32, i32) {
    %c0_i32 = arith.constant 0 : i32
    %c0_i32_0 = arith.constant 0 : i32
    return %arg0, %c0_i32 : i32, i32
  }
  func.func @transform_8(%arg0: i32, %arg1: i32) -> (i32, i32) {
    %c0_i32 = arith.constant 0 : i32
    %c0_i32_0 = arith.constant 0 : i32
    return %arg0, %c0_i32 : i32, i32
  }
  func.func @transform_9(%arg0: i32, %arg1: i32) -> (i32, i32) {
    %c0_i32 = arith.constant 0 : i32
    %c0_i32_0 = arith.constant 0 : i32
    return %arg0, %c0_i32 : i32, i32
  }
  func.func @transform_10(%arg0: i32, %arg1: i32) -> (i32, i32) {
    %c0_i32 = arith.constant 0 : i32
    %c0_i32_0 = arith.constant 0 : i32
    return %arg0, %c0_i32 : i32, i32
  }
}

</mosaic_0001>

<bundles_post_ra>
// kernel: tpu_custom_call.1
= control target key start
LH: loop header
LB: loop body
LE: loop exit
PB: predicated region body
PF: predicated region fallthrough
CT: control target
= control target key end

     0   :  { %s2804_s0 = inlined_call_operand.<no memory space> [shape: f32[1,1], index: 0, kind: input, shape index: {}]   ;;  %s2805_s1 = inlined_call_operand.vmem [shape: f32[64,128], index: 1, kind: input, shape index: {}]   ;;  %s2806_s2 = inlined_call_operand.vmem [shape: f32[64,128], index: 2, kind: input, shape index: {}]   ;;  %s2807_s3 = inlined_call_operand.vmem [shape: f32[64,128], index: 3, kind: input, shape index: {}]   ;;  %s2808_s4 = inlined_call_operand.hbm [shape: f32[64,128], index: 4, kind: input, shape index: {}]   ;;  %s2809_s5 = inlined_call_operand.vmem [shape: f32[64,1], index: 5, kind: input, shape index: {}]   ;;  %s2810_s6 = inlined_call_operand.vmem [shape: f32[64,1], index: 6, kind: input, shape index: {}]   ;;  %s2811_s7 = inlined_call_operand.vmem [shape: f32[64,1], index: 7, kind: input, shape index: {}]   ;;  %s2812_s8 = inlined_call_operand.vmem [shape: f32[64,1], index: 8, kind: output, shape index: {0}]   ;;  %s2813_s9 = inlined_call_operand.vmem [shape: f32[64,1], index: 9, kind: output, shape index: {1}]   ;;  %s2814_s10 = inlined_call_operand.vmem [shape: f32[64,1], index: 10, kind: output, shape index: {2}]  }
   0x1   :  { %16 = sst [smem:[#allocation10]] %s2804_s0 }
   0x2   :  { %17 = vsyncpa [#allocation12], 0  ;;  %s2102_s15 = smov 0   ;;  %s2104_s6 = smov 0  }
   0x3   :  { %s2106_s16 = smov 0  }
   0x4 LB: > { %s1750_s0 = sadd.s32 4294967295, %s2033_s16   ;;  %s35_s7 = sadd.s32 1, %s2029_s6  ;;  %s2033_s16 = sphi %s2106_s16, %s23_s16   ;;  %s2029_s6 = sphi %s2104_s6, %s2825_s6   ;;  %s2025_s15 = sphi %s2102_s15, %s2824_s15  }
   0x5   : > { %p37_p0 = scmp.ge.s32.totalorder %s35_s7, 2  ;;  %p1752_p1 = scmp.ge.s32.totalorder %s2033_s16, 1 }
   0x6   : > { %p321_p2 = scmp.lt.s32.totalorder %s2033_s16, 3  ;;  %p1806_p4 = scmp.eq.s32.totalorder %s1750_s0, 0 }
   0x7   : > { %s2827_s7 = smov (%p37_p0, %s35_s7), 0  ;;  %s347_s19 = sshll.u32 %s2808_s4, 4  ;;  %s348_s19 = int_to_ptr.hbm [resolvable:$true] %s347_s19 }
   0x8   : > { %p322_p3 = pnand %p1752_p1, %p321_p2  ;;  %s2035_s20 = smov [#allocation11]  }
   0x9   : > { %s349_s21 = sshll.u32 %s2035_s20, 4  ;;  %s2036_s22 = smov 128   ;;  %s350_s21 = int_to_ptr.vmem [resolvable:$true] %s349_s21 }
   0xa   : > { %p1802_p5 = pneg %p322_p3  ;;  %s2037_s23 = smov 8  }
   0xb   : > { %410 = sbr.rel (%p322_p3) target bundleno = 1132 (0x46c), region = 52 }
   0xc   : > { %p1803_p6 = pnand %p1806_p4, %p1802_p5 }
   0xe   : > { %1805 = dma.hbm_to_vmem [thread:$0]  (!%p1803_p6), %s348_s19, 1024, %s350_s21, [#allocation12], %s2036_s22, %s2036_s22, %s2037_s23  }
  0x10   : > { %2020 = dma.done.wait (%p1806_p4), [#allocation12], 1024  }
  0x11   : > { %2022 = vsyncadd (%p1806_p4), [#allocation12], 4294966272  ;;  %vm543_vm0 = vcmask 7168   ;;  %v2038_v0 = vmov -1e+30   ;;  %s1758_s24 = sshll.u32 %s2025_s15, 2 }
  0x12   : > { %544 = vst.msk [vmem:[#allocation2] sm:$0xff] %vm543_vm0, %v2038_v0  ;;  %p485_p7 = scmp.lt.s32.totalorder %s1758_s24, 7  ;;  %v592_v1 = vld [vmem:[#allocation11 + $0x38] sm:$0xff]  ;;  %v591_v3 = vld [vmem:[#allocation11 + $0x30] sm:$0xff]  ;;  %v2039_v5 = vmov 0   ;;  %v590_v6 = vld [vmem:[#allocation11 + $0x28] sm:$0xff] }
  0x13   : > { %545 = vst.msk [vmem:[#allocation2 + $0x8] sm:$0xff] %vm543_vm0, %v2038_v0  ;;  %v633_v2 = vld [vmem:[%s2807_s3 + $0x38] sm:$0xff]  ;;  %601 = vmatpush.xpose.msra.mxu0 %v592_v1  ;;  %1782 = vmatpush.xpose.msra.mxu2 %v592_v1  ;;  %v632_v4 = vld [vmem:[%s2807_s3 + $0x30] sm:$0xff]  ;;  %v631_v7 = vld [vmem:[%s2807_s3 + $0x28] sm:$0xff]  ;;  %v2040_v10 = vmov 0.0   ;;  %s576_s29 = sld [smem:[#allocation10]] }
  0x14   : > { %546 = vst.msk [vmem:[#allocation2 + $0x10] sm:$0xff] %vm543_vm0, %v2038_v0  ;;  %s2829_s24 = smov (!%p485_p7, %s1758_s24), 7  ;;  %642 = vmatpush.xpose.msra.mxu1 %v633_v2  ;;  %1790 = vmatpush.xpose.msra.mxu3 %v633_v2  ;;  %v589_v11 = vld [vmem:[#allocation11 + $0x20] sm:$0xff]  ;;  %v588_v13 = vld [vmem:[#allocation11 + $0x18] sm:$0xff]  ;;  %v587_v17 = vld [vmem:[#allocation11 + $0x10] sm:$0xff] }
  0x15   : > { %547 = vst.msk [vmem:[#allocation2 + $0x18] sm:$0xff] %vm543_vm0, %v2038_v0  ;;  %s2133_s25 = sshll.u32 %s2829_s24, 3  ;;  %1842 = vset.pattern.permute.xlu1 %v2039_v5  ;;  %1841 = vset.pattern.permute.xlu0 %v2039_v5  ;;  %v630_v12 = vld [vmem:[%s2807_s3 + $0x20] sm:$0xff]  ;;  %v629_v14 = vld [vmem:[%s2807_s3 + $0x18] sm:$0xff]  ;;  %v628_v18 = vld [vmem:[%s2807_s3 + $0x10] sm:$0xff] }
  0x16   : > { %548 = vst.msk [vmem:[#allocation6] sm:$0xff] %vm543_vm0, %v2038_v0  ;;  %s2143_s30 = scalar_lea.vmem %s2812_s8, %s2133_s25  ;;  %s2150_s13 = scalar_lea.vmem %s2813_s9, %s2133_s25  ;;  %v586_v19 = vld [vmem:[#allocation11 + $0x8] sm:$0xff]  ;;  %v585_v21 = vld [vmem:[#allocation11] sm:$0xff] }
  0x17   : > { %549 = vst.msk [vmem:[#allocation6 + $0x8] sm:$0xff] %vm543_vm0, %v2038_v0  ;;  %s2156_s17 = scalar_lea.vmem %s2814_s10, %s2133_s25  ;;  %602 = vmatpush.xpose.msra.mxu0 %v591_v3  ;;  %1783 = vmatpush.xpose.msra.mxu2 %v591_v3  ;;  %s507_s22 = scalar_lea.vmem %s2809_s5, %s2133_s25  ;;  %v627_v20 = vld [vmem:[%s2807_s3 + $0x8] sm:$0xff]  ;;  %v626_v22 = vld [vmem:[%s2807_s3] sm:$0xff] }
  0x18   : > { %550 = vst.msk [vmem:[#allocation6 + $0x10] sm:$0xff] %vm543_vm0, %v2038_v0  ;;  %643 = vmatpush.xpose.msra.mxu1 %v632_v4  ;;  %1791 = vmatpush.xpose.msra.mxu3 %v632_v4  ;;  %v579_v8 = vld [vmem:[%s507_s22 + $0x10] sm:$0xff]  ;;  %v577_v9 = vld [vmem:[%s507_s22] sm:$0xff]  ;;  %v580_v15 = vld [vmem:[%s507_s22 + $0x18] sm:$0xff]  ;;  %s488_s20 = scalar_lea.vmem %s2805_s1, %s2133_s25  ;;  %s494_s26 = scalar_lea.vmem %s2806_s2, %s2133_s25 }
  0x19   : > { %551 = vst.msk [vmem:[#allocation6 + $0x18] sm:$0xff] %vm543_vm0, %v2038_v0  ;;  %675 = vperm.xlu1 %1842, %v579_v8   ;;  %665 = vperm.xlu0 %1841, %v577_v9   ;;  %v578_v16 = vld [vmem:[%s507_s22 + $0x8] sm:$0xff]  ;;  %v581_v23 = vld [vmem:[%s488_s20] sm:$0xff]  ;;  %v583_v24 = vld [vmem:[%s488_s20 + $0x10] sm:$0xff]  ;;  %s2216_s25 = sshll.u32 %s2025_s15, 5  ;;  %v687_v33 = vstv %s576_s29 }
  0x1a   : > { %552 = vst.msk [vmem:[#allocation5] sm:$0xff] %vm543_vm0, %v2038_v0  ;;  %v622_v25 = vld [vmem:[%s494_s26] sm:$0xff]  ;;  %v624_v26 = vld [vmem:[%s494_s26 + $0x10] sm:$0xff]  ;;  %v582_v27 = vld [vmem:[%s488_s20 + $0x8] sm:$0xff]  ;;  %s704_s27 = sadd.s32 32, %s2216_s25  ;;  %p703_p8 = scmp.lt.s32.totalorder %s2216_s25, 64 }
  0x1b   : > { %553 = vst.msk [vmem:[#allocation5 + $0x8] sm:$0xff] %vm543_vm0, %v2038_v0  ;;  %603 = vmatpush.xpose.msra.mxu0 %v590_v6  ;;  %1784 = vmatpush.xpose.msra.mxu2 %v590_v6  ;;  %v584_v28 = vld [vmem:[%s488_s20 + $0x18] sm:$0xff]  ;;  %v623_v29 = vld [vmem:[%s494_s26 + $0x8] sm:$0xff]  ;;  %p1771_p9 = scmp.gt.s32.totalorder %s704_s27, 0 }
  0x1c   : > { %554 = vst.msk [vmem:[#allocation5 + $0x10] sm:$0xff] %vm543_vm0, %v2038_v0  ;;  %644 = vmatpush.xpose.msra.mxu1 %v631_v7  ;;  %1792 = vmatpush.xpose.msra.mxu3 %v631_v7  ;;  %v625_v30 = vld [vmem:[%s494_s26 + $0x18] sm:$0xff] }
  0x1d   : > { %555 = vst.msk [vmem:[#allocation5 + $0x18] sm:$0xff] %vm543_vm0, %v2038_v0  ;;  %p2220_p10 = pnand %p1771_p9, %p703_p8 }
  0x1e   : > { %556 = vst.msk [vmem:[#allocation9] sm:$0xff] %vm543_vm0, %v2038_v0 }
  0x1f   : > { %557 = vst.msk [vmem:[#allocation9 + $0x8] sm:$0xff] %vm543_vm0, %v2038_v0  ;;  %604 = vmatpush.xpose.msra.mxu0 %v589_v11  ;;  %1785 = vmatpush.xpose.msra.mxu2 %v589_v11 }
  0x20   : > { %558 = vst.msk [vmem:[#allocation9 + $0x10] sm:$0xff] %vm543_vm0, %v2038_v0  ;;  %645 = vmatpush.xpose.msra.mxu1 %v630_v12  ;;  %1793 = vmatpush.xpose.msra.mxu3 %v630_v12 }
  0x21   : > { %559 = vst.msk [vmem:[#allocation9 + $0x18] sm:$0xff] %vm543_vm0, %v2038_v0  ;;  %680 = vperm.xlu1 %1842, %v580_v15   ;;  %670 = vperm.xlu0 %1841, %v578_v16  }
  0x22   : > { %560 = vst.msk [vmem:[#allocation3] sm:$0xff] %vm543_vm0, %v2040_v10 }
  0x23   : > { %561 = vst.msk [vmem:[#allocation3 + $0x8] sm:$0xff] %vm543_vm0, %v2040_v10  ;;  %605 = vmatpush.xpose.msra.mxu0 %v588_v13  ;;  %1786 = vmatpush.xpose.msra.mxu2 %v588_v13 }
  0x24   : > { %562 = vst.msk [vmem:[#allocation3 + $0x10] sm:$0xff] %vm543_vm0, %v2040_v10  ;;  %646 = vmatpush.xpose.msra.mxu1 %v629_v14  ;;  %1794 = vmatpush.xpose.msra.mxu3 %v629_v14 }
  0x25   : > { %563 = vst.msk [vmem:[#allocation3 + $0x18] sm:$0xff] %vm543_vm0, %v2040_v10 }
  0x26   : > { %564 = vst.msk [vmem:[#allocation7] sm:$0xff] %vm543_vm0, %v2040_v10 }
  0x27   : > { %565 = vst.msk [vmem:[#allocation7 + $0x8] sm:$0xff] %vm543_vm0, %v2040_v10  ;;  %606 = vmatpush.xpose.msra.mxu0 %v587_v17  ;;  %1787 = vmatpush.xpose.msra.mxu2 %v587_v17 }
  0x28   : > { %566 = vst.msk [vmem:[#allocation7 + $0x10] sm:$0xff] %vm543_vm0, %v2040_v10  ;;  %647 = vmatpush.xpose.msra.mxu1 %v628_v18  ;;  %1795 = vmatpush.xpose.msra.mxu3 %v628_v18 }
  0x29   : > { %567 = vst.msk [vmem:[#allocation7 + $0x18] sm:$0xff] %vm543_vm0, %v2040_v10 }
  0x2a   : > { %568 = vst.msk [vmem:[#allocation4] sm:$0xff] %vm543_vm0, %v2040_v10 }
  0x2b   : > { %569 = vst.msk [vmem:[#allocation4 + $0x8] sm:$0xff] %vm543_vm0, %v2040_v10  ;;  %607 = vmatpush.xpose.msra.mxu0 %v586_v19  ;;  %1788 = vmatpush.xpose.msra.mxu2 %v586_v19 }
  0x2c   : > { %570 = vst.msk [vmem:[#allocation4 + $0x10] sm:$0xff] %vm543_vm0, %v2040_v10  ;;  %648 = vmatpush.xpose.msra.mxu1 %v627_v20  ;;  %1796 = vmatpush.xpose.msra.mxu3 %v627_v20 }
  0x2d   : > { %571 = vst.msk [vmem:[#allocation4 + $0x18] sm:$0xff] %vm543_vm0, %v2040_v10 }
  0x2e   : > { %572 = vst.msk [vmem:[#allocation8] sm:$0xff] %vm543_vm0, %v2040_v10 }
  0x2f   : > { %573 = vst.msk [vmem:[#allocation8 + $0x8] sm:$0xff] %vm543_vm0, %v2040_v10  ;;  %608 = vmatpush.xpose.msra.mxu0 %v585_v21  ;;  %1789 = vmatpush.xpose.msra.mxu2 %v585_v21 }
  0x30   : > { %574 = vst.msk [vmem:[#allocation8 + $0x10] sm:$0xff] %vm543_vm0, %v2040_v10  ;;  %649 = vmatpush.xpose.msra.mxu1 %v626_v22  ;;  %1797 = vmatpush.xpose.msra.mxu3 %v626_v22 }
  0x31   : > { %575 = vst.msk [vmem:[#allocation8 + $0x18] sm:$0xff] %vm543_vm0, %v2040_v10 }
  0x32   : > { %609 = vmatmul.f32.vlgmr.msra.gmra.mxu0 %v581_v23  ;;  %615 = vmatmul.f32.vlgmr.msra.gmra.mxu2 %v583_v24 }
  0x33   : > { %650 = vmatmul.f32.vlgmr.msra.gmra.mxu1 %v622_v25  ;;  %656 = vmatmul.f32.vlgmr.msra.gmra.mxu3 %v624_v26 }
  0x3a   : > { %612 = vmatmul.f32.gmra.mxu0 %v582_v27  ;;  %618 = vmatmul.f32.gmra.mxu2 %v584_v28 }
  0x3b   : > { %653 = vmatmul.f32.gmra.mxu1 %v623_v29  ;;  %659 = vmatmul.f32.gmra.mxu3 %v625_v30 }
  0x8b   : > { %v666_v31 = vpop.permute.xlu0 %665  ;;  %v676_v38 = vpop.permute.xlu1 %675 }
  0x93   : > { %v671_v44 = vpop.permute.xlu0 %670  ;;  %v681_v53 = vpop.permute.xlu1 %680 }
  0xaf   : > { %v610_v32 = vpop.f32.mrf.mxu0 }
  0xb0   : > { %v683_v34 = vsub.f32 %v610_v32, %v666_v31  ;;  %v651_v35 = vpop.f32.mrf.mxu1 }
  0xb1   : > { %v692_v36 = vsub.f32 %v651_v35, %v666_v31 }
  0xb2   : > { %v2224_v37 = vmul.f32 %v687_v33, %v683_v34 }
  0xb3   : > { %v2226_v39 = vmul.f32 %v692_v36, %v687_v33 }
  0xb5   : > { %v616_v40 = vpop.f32.mrf.mxu2 }
  0xb6   : > { %v685_v41 = vsub.f32 %v616_v40, %v676_v38  ;;  %v657_v42 = vpop.f32.mrf.mxu3 }
  0xb7   : > { %v694_v43 = vsub.f32 %v657_v42, %v676_v38  ;;  %v613_v45 = vpop.f32.mrf.mxu0 }
  0xb8   : > { %v2228_v46 = vmul.f32 %v687_v33, %v685_v41  ;;  %v684_v47 = vsub.f32 %v613_v45, %v671_v44  ;;  %v654_v48 = vpop.f32.mrf.mxu1 }
  0xb9   : > { %v2230_v49 = vmul.f32 %v694_v43, %v687_v33  ;;  %v693_v50 = vsub.f32 %v654_v48, %v671_v44 }
  0xba   : > { %v2232_v51 = vmul.f32 %v687_v33, %v684_v47 }
  0xbb   : > { %v2234_v52 = vmul.f32 %v693_v50, %v687_v33 }
  0xbd   : > { %v619_v54 = vpop.f32.mrf.mxu2  ;;  %709 = sbr.rel (%p2220_p10) target bundleno = 641 (0x281), region = 64 }
  0xbe   : > { %v686_v55 = vsub.f32 %v619_v54, %v681_v53  ;;  %v660_v56 = vpop.f32.mrf.mxu3 }
  0xbf   : > { %v695_v57 = vsub.f32 %v660_v56, %v681_v53 }
  0xc0   : > { %v2236_v58 = vmul.f32 %v687_v33, %v686_v55 }
  0xc1   : > { %v2238_v59 = vmul.f32 %v695_v57, %v687_v33 }
  0xc2   : > { %v710_v60 = vlaneseq  ;;  %v715_v61 = vstv %s2216_s25  ;;  %vm737_vm1 = vcmask 523264   ;;  %v2041_v8 = vmov 0.0   ;;  %v2401_v43 = vld [vmem:[#allocation2 + $0x18] sm:$0xff] }
  0xc4   : > { %v711_v62 = vshrl.u32 %v710_v60, 7  ;;  %v721_v63 = vand.u32 127, %v710_v60  ;;  %v770_v60 = vld [vmem:[#allocation5] sm:$0xff] }
  0xc6   : > { %v716_v0 = vadd.s32 %v715_v61, %v711_v62  ;;  %v713_v1 = vadd.s32 16, %v711_v62  ;;  %v712_v2 = vadd.s32 8, %v711_v62  ;;  %v714_v3 = vadd.s32 24, %v711_v62 }
  0xc7   : > { %vm728_vm6 = vcmp.ge.s32.totalorder %v721_v63, 64 }
  0xc8   : > { %vm724_vm2 = vcmp.eq.s32.totalorder %v716_v0, %v721_v63  ;;  %v718_v4 = vadd.s32 %v715_v61, %v713_v1  ;;  %v717_v5 = vadd.s32 %v715_v61, %v712_v2  ;;  %v719_v6 = vadd.s32 %v715_v61, %v714_v3  ;;  %v771_v2 = vld [vmem:[#allocation5 + $0x8] sm:$0xff] }
  0xc9   : > { %v754_v7 = vsel %vm724_vm2, %v2224_v37, 0.0  ;;  %v733_v9 = vsel %vm724_vm2, 1.0, %v2041_v8  ;;  %v783_v20 = vsel %vm724_vm2, %v2226_v39, 0.0  ;;  %vm2276_vm7 = vmor %vm724_vm2, %vm728_vm6  ;;  %v2042_v1 = vmov 0  }
  0xca   : > { %v758_v10 = vsel %vm737_vm1, %v754_v7, 0.0  ;;  %v738_v11 = vsel %vm737_vm1, %v733_v9, 0.0  ;;  %vm726_vm3 = vcmp.eq.s32.totalorder %v718_v4, %v721_v63  ;;  %vm725_vm4 = vcmp.eq.s32.totalorder %v717_v5, %v721_v63  ;;  %1845 = vset.pattern.permute.xlu0 %v2042_v1  ;;  %1843 = vset.pattern.permute.xlu1 %v2042_v1  ;;  %v799_v7 = vld [vmem:[#allocation9] sm:$0xff] }
  0xcb   : > { %759 = vadd.xlane.f32.xlu2 %v758_v10  ;;  %739 = vadd.xlane.f32.xlu0 %v738_v11  ;;  %v735_v12 = vsel %vm726_vm3, 1.0, %v2041_v8  ;;  %vm727_vm5 = vcmp.eq.s32.totalorder %v719_v6, %v721_v63  ;;  %v755_v14 = vsel %vm725_vm4, %v2232_v51, 0.0  ;;  %v734_v15 = vsel %vm725_vm4, 1.0, %v2041_v8  ;;  %vm2283_vm8 = vmor %vm726_vm3, %vm728_vm6  ;;  %v773_v11 = vld [vmem:[#allocation5 + $0x18] sm:$0xff] }
  0xcc   : > { %v744_v13 = vsel %vm737_vm1, %v735_v12, 0.0  ;;  %v736_v16 = vsel %vm727_vm5, 1.0, %v2041_v8  ;;  %v761_v17 = vsel %vm737_vm1, %v755_v14, 0.0  ;;  %v741_v18 = vsel %vm737_vm1, %v734_v15, 0.0  ;;  %vm2289_vm9 = vmor %vm725_vm4, %vm728_vm6  ;;  %1844 = vset.pattern.permute.xlu2 %v2042_v1  ;;  %v772_v8 = vld [vmem:[#allocation5 + $0x10] sm:$0xff] }
  0xcd   : > { %745 = vadd.xlane.f32.xlu1 %v744_v13  ;;  %v747_v19 = vsel %vm737_vm1, %v736_v16, 0.0  ;;  %v756_v21 = vsel %vm726_vm3, %v2228_v46, 0.0  ;;  %v757_v22 = vsel %vm727_vm5, %v2236_v58, 0.0  ;;  %v787_v23 = vsel %vm737_vm1, %v783_v20, 0.0  ;;  %vm2316_vm10 = vmor %vm727_vm5, %vm728_vm6  ;;  %v802_v16 = vld [vmem:[#allocation9 + $0x18] sm:$0xff]  ;;  %v801_v20 = vld [vmem:[#allocation9 + $0x10] sm:$0xff] }
  0xce   : > { %v764_v24 = vsel %vm737_vm1, %v756_v21, 0.0  ;;  %v767_v25 = vsel %vm737_vm1, %v757_v22, 0.0  ;;  %v786_v26 = vsel %vm727_vm5, %v2238_v59, 0.0  ;;  %v784_v27 = vsel %vm725_vm4, %v2234_v52, 0.0 }
  0xcf   : > { %v785_v28 = vsel %vm726_vm3, %v2230_v49, 0.0  ;;  %v796_v29 = vsel %vm737_vm1, %v786_v26, 0.0  ;;  %v790_v30 = vsel %vm737_vm1, %v784_v27, 0.0  ;;  %v2296_v35 = vsel %vm2283_vm8, -1e+30, %v2228_v46  ;;  %v2371_v26 = vld [vmem:[#allocation2] sm:$0xff] }
  0xd0   : > { %v793_v32 = vsel %vm737_vm1, %v785_v28, 0.0  ;;  %v2301_v36 = vsel %vm2276_vm7, -1e+30, %v2224_v37  ;;  %v2306_v38 = vsel %vm2289_vm9, -1e+30, %v2232_v51  ;;  %v825_v40 = vsel %vm737_vm1, %v2296_v35, -inf }
  0xd1   : > { %v819_v41 = vsel %vm737_vm1, %v2301_v36, -inf  ;;  %v822_v42 = vsel %vm737_vm1, %v2306_v38, -inf  ;;  %v2323_v44 = vsel %vm2276_vm7, -1e+30, %v2226_v39  ;;  %v2328_v45 = vsel %vm2316_vm10, -1e+30, %v2236_v58 }
  0xd2   : > { %v951_v47 = vsel %vm737_vm1, %v2323_v44, -inf  ;;  %v828_v48 = vsel %vm737_vm1, %v2328_v45, -inf  ;;  %v2337_v50 = vsel %vm2289_vm9, -1e+30, %v2234_v52  ;;  %v2342_v53 = vsel %vm2283_vm8, -1e+30, %v2230_v49 }
  0xd3   : > { %762 = vadd.xlane.f32.xlu2 %v761_v17  ;;  %742 = vadd.xlane.f32.xlu0 %v741_v18  ;;  %v954_v54 = vsel %vm737_vm1, %v2337_v50, -inf  ;;  %v957_v55 = vsel %vm737_vm1, %v2342_v53, -inf  ;;  %v2351_v56 = vsel %vm2316_vm10, -1e+30, %v2238_v59  ;;  %v800_v17 = vld [vmem:[#allocation9 + $0x8] sm:$0xff] }
  0xd4   : > { %v960_v57 = vsel %vm737_vm1, %v2351_v56, -inf }
  0xd5   : > { %748 = vadd.xlane.f32.xlu1 %v747_v19 }
  0xdb   : > { %788 = vadd.xlane.f32.xlu2 %v787_v23  ;;  %765 = vadd.xlane.f32.xlu0 %v764_v24 }
  0xdd   : > { %768 = vadd.xlane.f32.xlu1 %v767_v25  ;;  %v2369_v25 = vld [vmem:[#allocation2 + $0x10] sm:$0xff] }
  0xe3   : > { %797 = vadd.xlane.f32.xlu2 %v796_v29  ;;  %791 = vadd.xlane.f32.xlu0 %v790_v30  ;;  %v2373_v29 = vld [vmem:[#allocation2 + $0x8] sm:$0xff] }
  0xe5   : > { %794 = vadd.xlane.f32.xlu1 %v793_v32 }
  0xeb   : > { %826 = vmax.xlane.f32.xlu2 %v825_v40  ;;  %820 = vmax.xlane.f32.xlu0 %v819_v41 }
  0xed   : > { %823 = vmax.xlane.f32.xlu1 %v822_v42  ;;  %v2399_v42 = vld [vmem:[#allocation6] sm:$0xff] }
  0xf3   : > { %952 = vmax.xlane.f32.xlu2 %v951_v47  ;;  %829 = vmax.xlane.f32.xlu0 %v828_v48 }
  0xfb   : > { %955 = vmax.xlane.f32.xlu0 %v954_v54  ;;  %958 = vmax.xlane.f32.xlu2 %v957_v55 }
 0x103   : > { %961 = vmax.xlane.f32.xlu0 %v960_v57 }
 0x13e   : > { %v760_v61 = vpop.xlane.xlu2 %759  ;;  %v740_v62 = vpop.xlane.xlu0 %739 }
 0x13f   : > { %vm750_vm11 = vcmp.gt.f32.partialorder %v740_v62, 0.0  ;;  %v2420_v62 = vld [vmem:[#allocation6 + $0x10] sm:$0xff] }
 0x140   : > { %v774_v63 = vsel %vm750_vm11, %v760_v61, %v770_v60  ;;  %v746_v0 = vpop.xlane.xlu1 %745  ;;  %v2418_v61 = vld [vmem:[#allocation6 + $0x8] sm:$0xff] }
 0x141   : > { %779 = vst.msk [vmem:[#allocation5] sm:$0xff] %vm543_vm0, %v774_v63  ;;  %vm752_vm13 = vcmp.gt.f32.partialorder %v746_v0, 0.0 }
 0x146   : > { %v763_v3 = vpop.xlane.xlu2 %762  ;;  %v743_v4 = vpop.xlane.xlu0 %742 }
 0x147   : > { %vm751_vm12 = vcmp.gt.f32.partialorder %v743_v4, 0.0 }
 0x148   : > { %v775_v5 = vsel %vm751_vm12, %v763_v3, %v771_v2  ;;  %v749_v6 = vpop.xlane.xlu1 %748 }
 0x149   : > { %780 = vst.msk [vmem:[#allocation5 + $0x8] sm:$0xff] %vm543_vm0, %v775_v5  ;;  %vm753_vm14 = vcmp.gt.f32.partialorder %v749_v6, 0.0  ;;  %v2438_v5 = vld [vmem:[#allocation6 + $0x18] sm:$0xff] }
 0x14e   : > { %v789_v9 = vpop.xlane.xlu2 %788  ;;  %v766_v10 = vpop.xlane.xlu0 %765 }
 0x14f   : > { %v803_v12 = vsel %vm750_vm11, %v789_v9, %v799_v7  ;;  %v776_v13 = vsel %vm752_vm13, %v766_v10, %v772_v8 }
 0x150   : > { %807 = vst.msk [vmem:[#allocation9] sm:$0xff] %vm543_vm0, %v803_v12  ;;  %v769_v14 = vpop.xlane.xlu1 %768 }
 0x151   : > { %781 = vst.msk [vmem:[#allocation5 + $0x10] sm:$0xff] %vm543_vm0, %v776_v13  ;;  %v777_v15 = vsel %vm753_vm14, %v769_v14, %v773_v11 }
 0x152   : > { %782 = vst.msk [vmem:[#allocation5 + $0x18] sm:$0xff] %vm543_vm0, %v777_v15 }
 0x156   : > { %v798_v18 = vpop.xlane.xlu2 %797  ;;  %v792_v19 = vpop.xlane.xlu0 %791 }
 0x157   : > { %v806_v21 = vsel %vm753_vm14, %v798_v18, %v802_v16  ;;  %v804_v22 = vsel %vm751_vm12, %v792_v19, %v800_v17 }
 0x158   : > { %810 = vst.msk [vmem:[#allocation9 + $0x18] sm:$0xff] %vm543_vm0, %v806_v21  ;;  %v795_v23 = vpop.xlane.xlu1 %794 }
 0x159   : > { %808 = vst.msk [vmem:[#allocation9 + $0x8] sm:$0xff] %vm543_vm0, %v804_v22  ;;  %v805_v24 = vsel %vm752_vm13, %v795_v23, %v801_v20 }
 0x15a   : > { %809 = vst.msk [vmem:[#allocation9 + $0x10] sm:$0xff] %vm543_vm0, %v805_v24 }
 0x15e   : > { %v827_v27 = vpop.xlane.xlu2 %826  ;;  %v821_v28 = vpop.xlane.xlu0 %820 }
 0x15f   : > { %v2376_v30 = vmax.f32 %v2369_v25, %v827_v27  ;;  %v2379_v31 = vmax.f32 %v2371_v26, %v821_v28 }
 0x160   : > { %v824_v32 = vpop.xlane.xlu1 %823 }
 0x161   : > { %v837_v33 = vsub.f32 %v2369_v25, %v2376_v30  ;;  %941 = vst.msk [vmem:[#allocation2 + $0x10] sm:$0xff] %vm543_vm0, %v2376_v30  ;;  %v835_v34 = vsub.f32 %v2371_v26, %v2379_v31  ;;  %v2388_v40 = vmax.f32 %v2373_v29, %v824_v32  ;;  %859 = vperm.xlu0 %1845, %v2376_v30  }
 0x162   : > { %849 = vperm.xlu1 %1843, %v2379_v31   ;;  %939 = vst.msk [vmem:[#allocation2] sm:$0xff] %vm543_vm0, %v2379_v31 }
 0x163   : > { %v836_v41 = vsub.f32 %v2373_v29, %v2388_v40  ;;  %940 = vst.msk [vmem:[#allocation2 + $0x8] sm:$0xff] %vm543_vm0, %v2388_v40  ;;  %854 = vperm.xlu2 %1844, %v2388_v40  }
 0x166   : > { %v953_v47 = vpop.xlane.xlu2 %952  ;;  %v830_v48 = vpop.xlane.xlu0 %829 }
 0x167   : > { %v2404_v54 = vmax.f32 %v2399_v42, %v953_v47  ;;  %v2407_v55 = vmax.f32 %v2401_v43, %v830_v48 }
 0x169   : > { %v967_v57 = vsub.f32 %v2399_v42, %v2404_v54  ;;  %1071 = vst.msk [vmem:[#allocation6] sm:$0xff] %vm543_vm0, %v2404_v54  ;;  %v838_v60 = vsub.f32 %v2401_v43, %v2407_v55 }
 0x16a   : > { %981 = vperm.xlu1 %1843, %v2404_v54   ;;  %942 = vst.msk [vmem:[#allocation2 + $0x18] sm:$0xff] %vm543_vm0, %v2407_v55 }
 0x16b   : > { %v971_v40 = vmul.f32 1.442695, %v967_v57  ;;  %v845_v54 = vmul.f32 1.442695, %v838_v60 }
 0x16e   : > { %v956_v63 = vpop.xlane.xlu0 %955  ;;  %v959_v0 = vpop.xlane.xlu2 %958 }
 0x16f   : > { %v2423_v1 = vmax.f32 %v2418_v61, %v956_v63  ;;  %v2426_v2 = vmax.f32 %v2420_v62, %v959_v0 }
 0x171   : > { %v968_v3 = vsub.f32 %v2418_v61, %v2423_v1  ;;  %1072 = vst.msk [vmem:[#allocation6 + $0x8] sm:$0xff] %vm543_vm0, %v2423_v1  ;;  %986 = vperm.xlu2 %1844, %v2423_v1   ;;  %v969_v4 = vsub.f32 %v2420_v62, %v2426_v2 }
 0x172   : > { %864 = vperm.xlu1 %1843, %v2407_v55   ;;  %1073 = vst.msk [vmem:[#allocation6 + $0x10] sm:$0xff] %vm543_vm0, %v2426_v2 }
 0x176   : > { %v962_v6 = vpop.xlane.xlu0 %961 }
 0x177   : > { %v2441_v7 = vmax.f32 %v2438_v5, %v962_v6 }
 0x179   : > { %v970_v8 = vsub.f32 %v2438_v5, %v2441_v7  ;;  %1074 = vst.msk [vmem:[#allocation6 + $0x18] sm:$0xff] %vm543_vm0, %v2441_v7  ;;  %996 = vperm.xlu2 %1844, %v2441_v7   ;;  %v1013_v7 = vld [vmem:[#allocation7 + $0x10] sm:$0xff] }
 0x17a   : > { %991 = vperm.xlu1 %1843, %v2426_v2  }
 0x17b   : > { %v977_v55 = vmul.f32 1.442695, %v970_v8 }
 0x1bd   : > { %v855_v9 = vpop.permute.xlu2 %854 }
 0x1be   : > { %v868_v10 = vsub.f32 %v2306_v38, %v855_v9 }
 0x1c0   : > { %v873_v11 = vmul.f32 1.442695, %v868_v10 }
 0x1c2   : > { %1846 = vpow2.f32 %v873_v11 }
 0x1c8   : > { %v1847_v12 = vpop.eup %1846 }
 0x1c9   : > { %v890_v13 = vsel %vm737_vm1, %v1847_v12, 0.0 }
 0x1ca   : > { %891 = vadd.xlane.f32.xlu2 %v890_v13 }
 0x1cb   : > { %v987_v20 = vpop.permute.xlu2 %986 }
 0x1cc   : > { %v1000_v21 = vsub.f32 %v2337_v50, %v987_v20 }
 0x1ce   : > { %v1005_v24 = vmul.f32 1.442695, %v1000_v21 }
 0x1d3   : > { %v860_v14 = vpop.permute.xlu0 %859  ;;  %v997_v48 = vpop.permute.xlu2 %996 }
 0x1d4   : > { %v869_v15 = vsub.f32 %v2296_v35, %v860_v14  ;;  %v850_v16 = vpop.permute.xlu1 %849  ;;  %v1002_v9 = vsub.f32 %v2351_v56, %v997_v48 }
 0x1d5   : > { %v867_v17 = vsub.f32 %v2301_v36, %v850_v16 }
 0x1d6   : > { %v875_v18 = vmul.f32 1.442695, %v869_v15  ;;  %v1009_v13 = vmul.f32 1.442695, %v1002_v9 }
 0x1d7   : > { %v871_v19 = vmul.f32 1.442695, %v867_v17 }
 0x1d8   : > { %1848 = vpow2.f32 %v875_v18 }
 0x1d9   : > { %1850 = vpow2.f32 %v871_v19 }
 0x1dc   : > { %v982_v38 = vpop.permute.xlu1 %981 }
 0x1dd   : > { %v999_v22 = vsub.f32 %v2323_v44, %v982_v38 }
 0x1de   : > { %v1849_v23 = vpop.eup %1848 }
 0x1df   : > { %v1003_v27 = vmul.f32 1.442695, %v999_v22  ;;  %v893_v28 = vsel %vm737_vm1, %v1849_v23, 0.0  ;;  %v1851_v32 = vpop.eup %1850  ;;  %v917_v21 = vmul.f32 %v1849_v23, %v2228_v46 }
 0x1e0   : > { %894 = vadd.xlane.f32.xlu0 %v893_v28  ;;  %v887_v35 = vsel %vm737_vm1, %v1851_v32, 0.0  ;;  %v915_v36 = vmul.f32 %v1851_v32, %v2224_v37 }
 0x1e1   : > { %1852 = vpow2.f32 %v1003_v27  ;;  %888 = vadd.xlane.f32.xlu1 %v887_v35  ;;  %v925_v22 = vsel %vm737_vm1, %v917_v21, 0.0  ;;  %v916_v27 = vmul.f32 %v1847_v12, %v2232_v51  ;;  %v841_v12 = vmul.f32 1.442695, %v836_v41  ;;  %v881_v41 = vld [vmem:[#allocation3 + $0x10] sm:$0xff] }
 0x1e2   : > { %1854 = vpow2.f32 %v1005_v24  ;;  %v919_v50 = vsel %vm737_vm1, %v915_v36, 0.0 }
 0x1e3   : > { %920 = vadd.xlane.f32.xlu2 %v919_v50  ;;  %v922_v35 = vsel %vm737_vm1, %v916_v27, 0.0 }
 0x1e4   : > { %v865_v47 = vpop.permute.xlu1 %864 }
 0x1e5   : > { %v870_v44 = vsub.f32 %v2328_v45, %v865_v47 }
 0x1e7   : > { %v1853_v63 = vpop.eup %1852  ;;  %v877_v0 = vmul.f32 1.442695, %v870_v44 }
 0x1e8   : > { %v1855_v6 = vpop.eup %1854  ;;  %v1019_v10 = vsel %vm737_vm1, %v1853_v63, 0.0  ;;  %v1047_v45 = vmul.f32 %v1853_v63, %v2226_v39  ;;  %v880_v63 = vld [vmem:[#allocation3 + $0x8] sm:$0xff] }
 0x1e9   : > { %1856 = vpow2.f32 %v877_v0  ;;  %1020 = vadd.xlane.f32.xlu1 %v1019_v10  ;;  %v1022_v11 = vsel %vm737_vm1, %v1855_v6, 0.0  ;;  %v1048_v36 = vmul.f32 %v1855_v6, %v2234_v52  ;;  %v843_v10 = vmul.f32 1.442695, %v837_v33  ;;  %v907_v33 = vld [vmem:[#allocation4] sm:$0xff] }
 0x1ea   : > { %1858 = vpow2.f32 %v1009_v13  ;;  %v1051_v56 = vsel %vm737_vm1, %v1047_v45, 0.0  ;;  %v1012_v45 = vld [vmem:[#allocation7 + $0x8] sm:$0xff] }
 0x1eb   : > { %1023 = vadd.xlane.f32.xlu2 %v1022_v11  ;;  %v1054_v47 = vsel %vm737_vm1, %v1048_v36, 0.0  ;;  %v839_v11 = vmul.f32 1.442695, %v835_v34 }
 0x1ec   : > { %v992_v14 = vpop.permute.xlu1 %991 }
 0x1ed   : > { %v1001_v15 = vsub.f32 %v2342_v53, %v992_v14  ;;  %v973_v14 = vmul.f32 1.442695, %v968_v3  ;;  %v1011_v3 = vld [vmem:[#allocation7] sm:$0xff] }
 0x1ef   : > { %v1857_v16 = vpop.eup %1856  ;;  %v1007_v17 = vmul.f32 1.442695, %v1001_v15  ;;  %v879_v15 = vld [vmem:[#allocation3] sm:$0xff] }
 0x1f0   : > { %v896_v18 = vsel %vm737_vm1, %v1857_v16, 0.0  ;;  %v1859_v19 = vpop.eup %1858  ;;  %v918_v24 = vmul.f32 %v1857_v16, %v2236_v58 }
 0x1f1   : > { %1860 = vpow2.f32 %v1007_v17  ;;  %897 = vadd.xlane.f32.xlu1 %v896_v18  ;;  %v1028_v53 = vsel %vm737_vm1, %v1859_v19, 0.0  ;;  %v1050_v28 = vmul.f32 %v1859_v19, %v2238_v59  ;;  %v975_v19 = vmul.f32 1.442695, %v969_v4 }
 0x1f2   : > { %v928_v32 = vsel %vm737_vm1, %v918_v24, 0.0  ;;  %1862 = vpow2.f32 %v841_v12 }
 0x1f3   : > { %1052 = vadd.xlane.f32.xlu2 %v1051_v56  ;;  %v1060_v23 = vsel %vm737_vm1, %v1050_v28, 0.0  ;;  %1864 = vpow2.f32 %v843_v10  ;;  %v908_v10 = vld [vmem:[#allocation4 + $0x8] sm:$0xff] }
 0x1f4   : > { %1866 = vpow2.f32 %v839_v11 }
 0x1f5   : > { %1868 = vpow2.f32 %v971_v40  ;;  %v1042_v40 = vld [vmem:[#allocation8 + $0x18] sm:$0xff] }
 0x1f6   : > { %1870 = vpow2.f32 %v973_v14 }
 0x1f7   : > { %v1861_v20 = vpop.eup %1860  ;;  %1872 = vpow2.f32 %v845_v54 }
 0x1f8   : > { %v1025_v38 = vsel %vm737_vm1, %v1861_v20, 0.0  ;;  %v1049_v50 = vmul.f32 %v1861_v20, %v2230_v49  ;;  %v2484_v44 = vpop.eup %1862  ;;  %1874 = vpow2.f32 %v975_v19 }
 0x1f9   : > { %1026 = vadd.xlane.f32.xlu0 %v1025_v38  ;;  %1029 = vadd.xlane.f32.xlu1 %v1028_v53  ;;  %v884_v0 = vmul.f32 %v2484_v44, %v880_v63  ;;  %v1865_v29 = vpop.eup %1864  ;;  %v882_v53 = vld [vmem:[#allocation3 + $0x18] sm:$0xff]  ;;  %1876 = vpow2.f32 %v977_v55 }
 0x1fa   : > { %v1057_v48 = vsel %vm737_vm1, %v1049_v50, 0.0  ;;  %v1867_v13 = vpop.eup %1866  ;;  %v885_v25 = vmul.f32 %v1865_v29, %v881_v41 }
 0x1fb   : > { %926 = vadd.xlane.f32.xlu2 %v925_v22  ;;  %v883_v31 = vmul.f32 %v1867_v13, %v879_v15  ;;  %v911_v42 = vmul.f32 %v1867_v13, %v907_v33  ;;  %v1869_v1 = vpop.eup %1868  ;;  %v1039_v22 = vld [vmem:[#allocation8] sm:$0xff]  ;;  %v912_v13 = vmul.f32 %v2484_v44, %v908_v10 }
 0x1fc   : > { %v1871_v17 = vpop.eup %1870  ;;  %v1015_v18 = vmul.f32 %v1869_v1, %v1011_v3  ;;  %v1043_v4 = vmul.f32 %v1869_v1, %v1039_v22 }
 0x1fd   : > { %v1016_v43 = vmul.f32 %v1871_v17, %v1012_v45  ;;  %v1873_v38 = vpop.eup %1872 }
 0x1fe   : > { %v886_v24 = vmul.f32 %v1873_v38, %v882_v53  ;;  %v1875_v28 = vpop.eup %1874 }
 0x1ff   : > { %v1877_v8 = vpop.eup %1876 }
 0x201   : > { %929 = vadd.xlane.f32.xlu0 %v928_v32  ;;  %923 = vadd.xlane.f32.xlu1 %v922_v35  ;;  %v1014_v32 = vld [vmem:[#allocation7 + $0x18] sm:$0xff]  ;;  %v1017_v35 = vmul.f32 %v1875_v28, %v1013_v7 }
 0x202   : > { %v1018_v50 = vmul.f32 %v1877_v8, %v1014_v32 }
 0x203   : > { %1061 = vadd.xlane.f32.xlu2 %v1060_v23  ;;  %v909_v23 = vld [vmem:[#allocation4 + $0x10] sm:$0xff] }
 0x204   : > { %v913_v63 = vmul.f32 %v1865_v29, %v909_v23 }
 0x209   : > { %1055 = vadd.xlane.f32.xlu0 %v1054_v47  ;;  %1058 = vadd.xlane.f32.xlu1 %v1057_v48 }
 0x23d   : > { %v892_v9 = vpop.xlane.xlu2 %891 }
 0x23e   : > { %v900_v6 = vadd.f32 %v892_v9, %v884_v0 }
 0x240   : > { %904 = vst.msk [vmem:[#allocation3 + $0x8] sm:$0xff] %vm543_vm0, %v900_v6  ;;  %v910_v6 = vld [vmem:[#allocation4 + $0x18] sm:$0xff] }
 0x241   : > { %v914_v11 = vmul.f32 %v1873_v38, %v910_v6 }
 0x253   : > { %v895_v30 = vpop.xlane.xlu0 %894 }
 0x254   : > { %v901_v26 = vadd.f32 %v895_v30, %v885_v25  ;;  %v889_v34 = vpop.xlane.xlu1 %888  ;;  %v1046_v30 = vmul.f32 %v1877_v8, %v1042_v40 }
 0x255   : > { %v899_v16 = vadd.f32 %v889_v34, %v883_v31  ;;  %v1041_v31 = vld [vmem:[#allocation8 + $0x10] sm:$0xff] }
 0x256   : > { %905 = vst.msk [vmem:[#allocation3 + $0x10] sm:$0xff] %vm543_vm0, %v901_v26  ;;  %v921_v57 = vpop.xlane.xlu2 %920  ;;  %v1040_v26 = vld [vmem:[#allocation8 + $0x8] sm:$0xff] }
 0x257   : > { %903 = vst.msk [vmem:[#allocation3] sm:$0xff] %vm543_vm0, %v899_v16  ;;  %v931_v61 = vadd.f32 %v921_v57, %v911_v42  ;;  %v1044_v34 = vmul.f32 %v1871_v17, %v1040_v26  ;;  %v1045_v42 = vmul.f32 %v1875_v28, %v1041_v31 }
 0x259   : > { %935 = vst.msk [vmem:[#allocation4] sm:$0xff] %vm543_vm0, %v931_v61 }
 0x25c   : > { %v1021_v56 = vpop.xlane.xlu1 %1020 }
 0x25d   : > { %v1031_v20 = vadd.f32 %v1021_v56, %v1015_v18 }
 0x25e   : > { %v1024_v60 = vpop.xlane.xlu2 %1023 }
 0x25f   : > { %1035 = vst.msk [vmem:[#allocation7] sm:$0xff] %vm543_vm0, %v1031_v20  ;;  %v1032_v21 = vadd.f32 %v1024_v60, %v1016_v43 }
 0x261   : > { %1036 = vst.msk [vmem:[#allocation7 + $0x8] sm:$0xff] %vm543_vm0, %v1032_v21 }
 0x264   : > { %v898_v62 = vpop.xlane.xlu1 %897 }
 0x265   : > { %v902_v2 = vadd.f32 %v898_v62, %v886_v24 }
 0x266   : > { %v1053_v27 = vpop.xlane.xlu2 %1052 }
 0x267   : > { %906 = vst.msk [vmem:[#allocation3 + $0x18] sm:$0xff] %vm543_vm0, %v902_v2  ;;  %v1063_v5 = vadd.f32 %v1053_v27, %v1043_v4 }
 0x269   : > { %1067 = vst.msk [vmem:[#allocation8] sm:$0xff] %vm543_vm0, %v1063_v5 }
 0x26c   : > { %v1027_v36 = vpop.xlane.xlu0 %1026  ;;  %v1030_v48 = vpop.xlane.xlu1 %1029 }
 0x26d   : > { %v1033_v47 = vadd.f32 %v1027_v36, %v1017_v35  ;;  %v1034_v12 = vadd.f32 %v1030_v48, %v1018_v50 }
 0x26e   : > { %v927_v0 = vpop.xlane.xlu2 %926 }
 0x26f   : > { %1037 = vst.msk [vmem:[#allocation7 + $0x10] sm:$0xff] %vm543_vm0, %v1033_v47  ;;  %v933_v9 = vadd.f32 %v927_v0, %v913_v63 }
 0x270   : > { %1038 = vst.msk [vmem:[#allocation7 + $0x18] sm:$0xff] %vm543_vm0, %v1034_v12 }
 0x271   : > { %937 = vst.msk [vmem:[#allocation4 + $0x10] sm:$0xff] %vm543_vm0, %v933_v9 }
 0x274   : > { %v930_v41 = vpop.xlane.xlu0 %929  ;;  %v924_v15 = vpop.xlane.xlu1 %923 }
 0x275   : > { %v934_v14 = vadd.f32 %v930_v41, %v914_v11  ;;  %v932_v25 = vadd.f32 %v924_v15, %v912_v13 }
 0x276   : > { %v1062_v29 = vpop.xlane.xlu2 %1061 }
 0x277   : > { %938 = vst.msk [vmem:[#allocation4 + $0x18] sm:$0xff] %vm543_vm0, %v934_v14  ;;  %v1066_v33 = vadd.f32 %v1062_v29, %v1046_v30 }
 0x278   : > { %936 = vst.msk [vmem:[#allocation4 + $0x8] sm:$0xff] %vm543_vm0, %v932_v25 }
 0x279   : > { %1070 = vst.msk [vmem:[#allocation8 + $0x18] sm:$0xff] %vm543_vm0, %v1066_v33 }
 0x27c   : > { %v1056_v16 = vpop.xlane.xlu0 %1055  ;;  %v1059_v57 = vpop.xlane.xlu1 %1058 }
 0x27d   : > { %v1064_v54 = vadd.f32 %v1056_v16, %v1044_v34  ;;  %v1065_v44 = vadd.f32 %v1059_v57, %v1045_v42 }
 0x27f   : > { %1068 = vst.msk [vmem:[#allocation8 + $0x8] sm:$0xff] %vm543_vm0, %v1064_v54 }
 0x280   : > { %1069 = vst.msk [vmem:[#allocation8 + $0x10] sm:$0xff] %vm543_vm0, %v1065_v44 }
 0x281 PF: > { %1077 = sbr.rel (!%p2220_p10) target bundleno = 1063 (0x427), region = 68  ;;  %vm1082_vm15 = vcmask (%p2220_p10), 523264   ;;  %v2043_v20 = vmov (%p2220_p10), 0   ;;  %v2543_v43 = vld [vmem:[#allocation2 + $0x10] sm:$0xff] (%p2220_p10)  ;;  %v2545_v55 = vld [vmem:[#allocation2] sm:$0xff] (%p2220_p10)  ;;  %v2572_v28 = vld [vmem:[#allocation2 + $0x8] sm:$0xff] (%p2220_p10) }
 0x282   : > { %v1089_v61 = vsel (%p2220_p10), %vm1082_vm15, %v2228_v46, -inf  ;;  %v1083_v1 = vsel (%p2220_p10), %vm1082_vm15, %v2224_v37, -inf  ;;  %v1212_v3 = vsel (%p2220_p10), %vm1082_vm15, %v2226_v39, -inf  ;;  %v1086_v17 = vsel (%p2220_p10), %vm1082_vm15, %v2232_v51, -inf  ;;  %1880 = vset.pattern.permute.xlu0 (%p2220_p10), %v2043_v20  ;;  %1878 = vset.pattern.permute.xlu2 (%p2220_p10), %v2043_v20  ;;  %v2547_v60 = vld [vmem:[#allocation6] sm:$0xff] (%p2220_p10)  ;;  %v2574_v5 = vld [vmem:[#allocation2 + $0x18] sm:$0xff] (%p2220_p10) }
 0x283   : > { %1090 = vmax.xlane.f32.xlu1 (%p2220_p10), %v1089_v61  ;;  %1084 = vmax.xlane.f32.xlu0 (%p2220_p10), %v1083_v1  ;;  %v1092_v45 = vsel (%p2220_p10), %vm1082_vm15, %v2236_v58, -inf  ;;  %v1215_v18 = vsel (%p2220_p10), %vm1082_vm15, %v2234_v52, -inf  ;;  %v1218_v56 = vsel (%p2220_p10), %vm1082_vm15, %v2230_v49, -inf  ;;  %v1221_v19 = vsel (%p2220_p10), %vm1082_vm15, %v2238_v59, -inf  ;;  %v2592_v50 = vld [vmem:[#allocation6 + $0x8] sm:$0xff] (%p2220_p10)  ;;  %v2594_v47 = vld [vmem:[#allocation6 + $0x10] sm:$0xff] (%p2220_p10) }
 0x284   : > { %1213 = vmax.xlane.f32.xlu2 (%p2220_p10), %v1212_v3  ;;  %1879 = vset.pattern.permute.xlu1 (%p2220_p10), %v2043_v20  ;;  %v2611_v10 = vld [vmem:[#allocation6 + $0x18] sm:$0xff] (%p2220_p10) }
 0x28b   : > { %1087 = vmax.xlane.f32.xlu0 %v1086_v17  ;;  %1093 = vmax.xlane.f32.xlu1 %v1092_v45 }
 0x293   : > { %1216 = vmax.xlane.f32.xlu0 %v1215_v18  ;;  %1219 = vmax.xlane.f32.xlu1 %v1218_v56 }
 0x29b   : > { %1222 = vmax.xlane.f32.xlu0 %v1221_v19 }
 0x2f6   : > { %v1091_v21 = vpop.xlane.xlu1 %1090  ;;  %v1085_v38 = vpop.xlane.xlu0 %1084 }
 0x2f7   : > { %v2550_v53 = vmax.f32 %v2543_v43, %v1091_v21  ;;  %v2553_v22 = vmax.f32 %v2545_v55, %v1085_v38  ;;  %v1214_v24 = vpop.xlane.xlu2 %1213 }
 0x2f8   : > { %v2556_v62 = vmax.f32 %v2547_v60, %v1214_v24 }
 0x2f9   : > { %v1101_v2 = vsub.f32 %v2543_v43, %v2550_v53  ;;  %1206 = vst.msk [vmem:[#allocation2 + $0x10] sm:$0xff] %vm543_vm0, %v2550_v53  ;;  %v1099_v4 = vsub.f32 %v2545_v55, %v2553_v22  ;;  %1123 = vperm.xlu0 %1880, %v2550_v53   ;;  %1113 = vperm.xlu2 %1878, %v2553_v22  }
 0x2fa   : > { %1204 = vst.msk [vmem:[#allocation2] sm:$0xff] %vm543_vm0, %v2553_v22  ;;  %v1228_v27 = vsub.f32 %v2547_v60, %v2556_v62 }
 0x2fb   : > { %1332 = vst.msk [vmem:[#allocation6] sm:$0xff] %vm543_vm0, %v2556_v62 }
 0x2fc   : > { %v1232_v55 = vmul.f32 1.442695, %v1228_v27 }
 0x2fe   : > { %v1088_v7 = vpop.xlane.xlu0 %1087  ;;  %v1094_v8 = vpop.xlane.xlu1 %1093 }
 0x2ff   : > { %v2577_v32 = vmax.f32 %v2572_v28, %v1088_v7  ;;  %v2580_v35 = vmax.f32 %v2574_v5, %v1094_v8 }
 0x301   : > { %v1100_v23 = vsub.f32 %v2572_v28, %v2577_v32  ;;  %1205 = vst.msk [vmem:[#allocation2 + $0x8] sm:$0xff] %vm543_vm0, %v2577_v32  ;;  %1118 = vperm.xlu1 %1879, %v2577_v32   ;;  %v1102_v36 = vsub.f32 %v2574_v5, %v2580_v35  ;;  %1242 = vperm.xlu2 %1878, %v2556_v62   ;;  %v1272_v62 = vld [vmem:[#allocation7] sm:$0xff] }
 0x302   : > { %1207 = vst.msk [vmem:[#allocation2 + $0x18] sm:$0xff] %vm543_vm0, %v2580_v35 }
 0x303   : > { %v1105_v22 = vmul.f32 1.442695, %v1100_v23  ;;  %v1109_v43 = vmul.f32 1.442695, %v1102_v36  ;;  %v1146_v36 = vld [vmem:[#allocation3 + $0x18] sm:$0xff] }
 0x306   : > { %v1217_v48 = vpop.xlane.xlu0 %1216  ;;  %v1220_v12 = vpop.xlane.xlu1 %1219 }
 0x307   : > { %v2597_v63 = vmax.f32 %v2592_v50, %v1217_v48  ;;  %v2600_v0 = vmax.f32 %v2594_v47, %v1220_v12 }
 0x309   : > { %v1229_v9 = vsub.f32 %v2592_v50, %v2597_v63  ;;  %1333 = vst.msk [vmem:[#allocation6 + $0x8] sm:$0xff] %vm543_vm0, %v2597_v63  ;;  %1128 = vperm.xlu1 %1879, %v2580_v35   ;;  %v1230_v6 = vsub.f32 %v2594_v47, %v2600_v0  ;;  %v1275_v50 = vld [vmem:[#allocation7 + $0x18] sm:$0xff]  ;;  %v1274_v47 = vld [vmem:[#allocation7 + $0x10] sm:$0xff] }
 0x30a   : > { %1334 = vst.msk [vmem:[#allocation6 + $0x10] sm:$0xff] %vm543_vm0, %v2600_v0 }
 0x30b   : > { %v1234_v5 = vmul.f32 1.442695, %v1229_v9  ;;  %v1273_v9 = vld [vmem:[#allocation7 + $0x8] sm:$0xff] }
 0x30e   : > { %v1223_v11 = vpop.xlane.xlu0 %1222 }
 0x30f   : > { %v2614_v40 = vmax.f32 %v2611_v10, %v1223_v11 }
 0x311   : > { %v1231_v41 = vsub.f32 %v2611_v10, %v2614_v40  ;;  %1335 = vst.msk [vmem:[#allocation6 + $0x18] sm:$0xff] %vm543_vm0, %v2614_v40  ;;  %1257 = vperm.xlu0 %1880, %v2614_v40   ;;  %1247 = vperm.xlu1 %1879, %v2597_v63   ;;  %v1236_v10 = vmul.f32 1.442695, %v1230_v6  ;;  %v1174_v6 = vld [vmem:[#allocation4 + $0x10] sm:$0xff] }
 0x319   : > { %1252 = vperm.xlu1 %1879, %v2600_v0   ;;  %v1173_v0 = vld [vmem:[#allocation4 + $0x8] sm:$0xff] }
 0x353   : > { %v1114_v13 = vpop.permute.xlu2 %1113 }
 0x354   : > { %v1131_v14 = vsub.f32 %v2224_v37, %v1114_v13 }
 0x356   : > { %v1135_v15 = vmul.f32 1.442695, %v1131_v14 }
 0x358   : > { %1881 = vpow2.f32 %v1135_v15 }
 0x35b   : > { %v1243_v29 = vpop.permute.xlu2 %1242 }
 0x35c   : > { %v1260_v31 = vsub.f32 %v2226_v39, %v1243_v29 }
 0x35e   : > { %v1882_v25 = vpop.eup %1881  ;;  %v1264_v16 = vmul.f32 1.442695, %v1260_v31 }
 0x35f   : > { %v1151_v30 = vsel %vm1082_vm15, %v1882_v25, 0.0 }
 0x360   : > { %1152 = vadd.xlane.f32.xlu1 %v1151_v30 }
 0x36b   : > { %v1124_v33 = vpop.permute.xlu0 %1123 }
 0x36c   : > { %v1133_v26 = vsub.f32 %v2228_v46, %v1124_v33 }
 0x36e   : > { %v1139_v34 = vmul.f32 1.442695, %v1133_v26 }
 0x370   : > { %1883 = vpow2.f32 %v1139_v34 }
 0x371   : > { %1885 = vpow2.f32 %v1264_v16 }
 0x373   : > { %v1119_v42 = vpop.permute.xlu1 %1118 }
 0x374   : > { %v1132_v54 = vsub.f32 %v2232_v51, %v1119_v42 }
 0x376   : > { %v1884_v57 = vpop.eup %1883  ;;  %v1137_v44 = vmul.f32 1.442695, %v1132_v54 }
 0x377   : > { %v1157_v61 = vsel %vm1082_vm15, %v1884_v57, 0.0  ;;  %v1886_v1 = vpop.eup %1885  ;;  %v1182_v31 = vmul.f32 %v1884_v57, %v2228_v46 }
 0x378   : > { %1887 = vpow2.f32 %v1137_v44  ;;  %1158 = vadd.xlane.f32.xlu0 %v1157_v61  ;;  %v1280_v45 = vsel %vm1082_vm15, %v1886_v1, 0.0  ;;  %v1180_v44 = vmul.f32 %v1882_v25, %v2224_v37  ;;  %v1103_v25 = vmul.f32 1.442695, %v1099_v4 }
 0x379   : > { %v1190_v54 = vsel %vm1082_vm15, %v1182_v31, 0.0 }
 0x37b   : > { %v1129_v3 = vpop.permute.xlu1 %1128 }
 0x37c   : > { %v1134_v17 = vsub.f32 %v2236_v58, %v1129_v3  ;;  %v1308_v3 = vmul.f32 %v1886_v1, %v2226_v39 }
 0x37e   : > { %v1888_v18 = vpop.eup %1887  ;;  %v1141_v56 = vmul.f32 1.442695, %v1134_v17  ;;  %v1312_v57 = vsel %vm1082_vm15, %v1308_v3, 0.0 }
 0x37f   : > { %v1154_v19 = vsel %vm1082_vm15, %v1888_v18, 0.0  ;;  %v1181_v26 = vmul.f32 %v1888_v18, %v2232_v51  ;;  %v1184_v51 = vsel %vm1082_vm15, %v1180_v44, 0.0 }
 0x380   : > { %1889 = vpow2.f32 %v1141_v56  ;;  %1155 = vadd.xlane.f32.xlu2 %v1154_v19  ;;  %1281 = vadd.xlane.f32.xlu0 %v1280_v45 }
 0x381   : > { %v1187_v42 = vsel %vm1082_vm15, %v1181_v26, 0.0 }
 0x383   : > { %v1258_v20 = vpop.permute.xlu0 %1257  ;;  %v1248_v21 = vpop.permute.xlu1 %1247 }
 0x384   : > { %v1263_v38 = vsub.f32 %v2238_v59, %v1258_v20  ;;  %v1261_v24 = vsub.f32 %v2234_v52, %v1248_v21  ;;  %v1145_v20 = vld [vmem:[#allocation3 + $0x10] sm:$0xff] }
 0x386   : > { %v1890_v7 = vpop.eup %1889  ;;  %v1270_v8 = vmul.f32 1.442695, %v1263_v38  ;;  %v1266_v48 = vmul.f32 1.442695, %v1261_v24 }
 0x387   : > { %v1160_v12 = vsel %vm1082_vm15, %v1890_v7, 0.0  ;;  %v1183_v17 = vmul.f32 %v1890_v7, %v2236_v58  ;;  %v1143_v58 = vld [vmem:[#allocation3] sm:$0xff] }
 0x388   : > { %1891 = vpow2.f32 %v1270_v8  ;;  %1161 = vadd.xlane.f32.xlu2 %v1160_v12 }
 0x389   : > { %1893 = vpow2.f32 %v1266_v48  ;;  %v1193_v18 = vsel %vm1082_vm15, %v1183_v17, 0.0  ;;  %v1238_v48 = vmul.f32 1.442695, %v1231_v41  ;;  %v1300_v17 = vld [vmem:[#allocation8] sm:$0xff] }
 0x38b   : > { %v1253_v11 = vpop.permute.xlu1 %1252 }
 0x38c   : > { %v1262_v13 = vsub.f32 %v2230_v49, %v1253_v11 }
 0x38e   : > { %v1892_v14 = vpop.eup %1891  ;;  %v1268_v15 = vmul.f32 1.442695, %v1262_v13 }
 0x38f   : > { %v1894_v30 = vpop.eup %1893  ;;  %v1289_v29 = vsel %vm1082_vm15, %v1892_v14, 0.0  ;;  %v1311_v45 = vmul.f32 %v1892_v14, %v2238_v59 }
 0x390   : > { %1895 = vpow2.f32 %v1268_v15  ;;  %v1283_v33 = vsel %vm1082_vm15, %v1894_v30, 0.0  ;;  %1290 = vadd.xlane.f32.xlu0 %v1289_v29  ;;  %v1309_v39 = vmul.f32 %v1894_v30, %v2234_v52  ;;  %v1107_v52 = vmul.f32 1.442695, %v1101_v2  ;;  %v1144_v2 = vld [vmem:[#allocation3 + $0x8] sm:$0xff] }
 0x391   : > { %1284 = vadd.xlane.f32.xlu2 %v1283_v33  ;;  %v1321_v37 = vsel %vm1082_vm15, %v1311_v45, 0.0  ;;  %1897 = vpow2.f32 %v1103_v25 }
 0x392   : > { %1899 = vpow2.f32 %v1107_v52  ;;  %v1303_v52 = vld [vmem:[#allocation8 + $0x18] sm:$0xff] }
 0x393   : > { %1901 = vpow2.f32 %v1232_v55 }
 0x394   : > { %1903 = vpow2.f32 %v1105_v22 }
 0x395   : > { %1905 = vpow2.f32 %v1109_v43 }
 0x396   : > { %v1896_v34 = vpop.eup %1895  ;;  %1907 = vpow2.f32 %v1238_v48 }
 0x397   : > { %v1286_v16 = vsel %vm1082_vm15, %v1896_v34, 0.0  ;;  %v1310_v61 = vmul.f32 %v1896_v34, %v2230_v49  ;;  %v1315_v49 = vsel %vm1082_vm15, %v1309_v39, 0.0  ;;  %v2658_v1 = vpop.eup %1897  ;;  %1909 = vpow2.f32 %v1234_v5 }
 0x398   : > { %1287 = vadd.xlane.f32.xlu1 %v1286_v16  ;;  %1188 = vadd.xlane.f32.xlu0 %v1187_v42  ;;  %v1147_v59 = vmul.f32 %v2658_v1, %v1143_v58  ;;  %v1900_v4 = vpop.eup %1899  ;;  %1911 = vpow2.f32 %v1236_v10 }
 0x399   : > { %1191 = vadd.xlane.f32.xlu2 %v1190_v54  ;;  %v1318_v46 = vsel %vm1082_vm15, %v1310_v61, 0.0  ;;  %v1149_v21 = vmul.f32 %v1900_v4, %v1145_v20  ;;  %v1902_v53 = vpop.eup %1901  ;;  %v1178_v54 = vmul.f32 %v1900_v4, %v1174_v6 }
 0x39a   : > { %v1904_v60 = vpop.eup %1903  ;;  %v1276_v27 = vmul.f32 %v1902_v53, %v1272_v62 }
 0x39b   : > { %v1148_v28 = vmul.f32 %v1904_v60, %v1144_v2  ;;  %v1906_v35 = vpop.eup %1905  ;;  %v1177_v34 = vmul.f32 %v1904_v60, %v1173_v0 }
 0x39c   : > { %v1150_v12 = vmul.f32 %v1906_v35, %v1146_v36  ;;  %v1908_v40 = vpop.eup %1907 }
 0x39d   : > { %v1910_v63 = vpop.eup %1909  ;;  %v1279_v41 = vmul.f32 %v1908_v40, %v1275_v50  ;;  %v1307_v4 = vmul.f32 %v1908_v40, %v1303_v52 }
 0x39e   : > { %v1277_v15 = vmul.f32 %v1910_v63, %v1273_v9  ;;  %v1912_v26 = vpop.eup %1911 }
 0x39f   : > { %v1278_v31 = vmul.f32 %v1912_v26, %v1274_v47 }
 0x3a0   : > { %1185 = vadd.xlane.f32.xlu1 %v1184_v51  ;;  %1319 = vadd.xlane.f32.xlu0 %v1318_v46  ;;  %v1172_v46 = vld [vmem:[#allocation4] sm:$0xff] }
 0x3a1   : > { %1313 = vadd.xlane.f32.xlu2 %v1312_v57  ;;  %v1302_v57 = vld [vmem:[#allocation8 + $0x10] sm:$0xff]  ;;  %v1176_v45 = vmul.f32 %v2658_v1, %v1172_v46 }
 0x3a8   : > { %1194 = vadd.xlane.f32.xlu1 %v1193_v18  ;;  %v1306_v18 = vmul.f32 %v1912_v26, %v1302_v57 }
 0x3a9   : > { %1322 = vadd.xlane.f32.xlu2 %v1321_v37 }
 0x3b0   : > { %1316 = vadd.xlane.f32.xlu1 %v1315_v49  ;;  %v1304_v49 = vmul.f32 %v1902_v53, %v1300_v17 }
 0x3d3   : > { %v1153_v56 = vpop.xlane.xlu1 %1152 }
 0x3d4   : > { %v1163_v19 = vadd.f32 %v1153_v56, %v1147_v59 }
 0x3d6   : > { %1168 = vst.msk [vmem:[#allocation3] sm:$0xff] %vm543_vm0, %v1163_v19  ;;  %v1175_v19 = vld [vmem:[#allocation4 + $0x18] sm:$0xff] }
 0x3d7   : > { %v1179_v55 = vmul.f32 %v1906_v35, %v1175_v19 }
 0x3eb   : > { %v1159_v38 = vpop.xlane.xlu0 %1158 }
 0x3ec   : > { %v1165_v24 = vadd.f32 %v1159_v38, %v1149_v21  ;;  %v1301_v38 = vld [vmem:[#allocation8 + $0x8] sm:$0xff] }
 0x3ee   : > { %1170 = vst.msk [vmem:[#allocation3 + $0x10] sm:$0xff] %vm543_vm0, %v1165_v24  ;;  %v1305_v24 = vmul.f32 %v1910_v63, %v1301_v38 }
 0x3f3   : > { %v1282_v32 = vpop.xlane.xlu0 %1281  ;;  %v1156_v23 = vpop.xlane.xlu2 %1155 }
 0x3f4   : > { %v1292_v7 = vadd.f32 %v1282_v32, %v1276_v27  ;;  %v1164_v8 = vadd.f32 %v1156_v23, %v1148_v28 }
 0x3f6   : > { %1296 = vst.msk [vmem:[#allocation7] sm:$0xff] %vm543_vm0, %v1292_v7 }
 0x3f7   : > { %1169 = vst.msk [vmem:[#allocation3 + $0x8] sm:$0xff] %vm543_vm0, %v1164_v8 }
 0x3fb   : > { %v1162_v11 = vpop.xlane.xlu2 %1161 }
 0x3fc   : > { %v1166_v13 = vadd.f32 %v1162_v11, %v1150_v12 }
 0x3fe   : > { %1171 = vst.msk [vmem:[#allocation3 + $0x18] sm:$0xff] %vm543_vm0, %v1166_v13 }
 0x403   : > { %v1291_v14 = vpop.xlane.xlu0 %1290 }
 0x404   : > { %v1295_v30 = vadd.f32 %v1291_v14, %v1279_v41  ;;  %v1285_v29 = vpop.xlane.xlu2 %1284 }
 0x405   : > { %v1293_v33 = vadd.f32 %v1285_v29, %v1277_v15 }
 0x406   : > { %1299 = vst.msk [vmem:[#allocation7 + $0x18] sm:$0xff] %vm543_vm0, %v1295_v30 }
 0x407   : > { %1297 = vst.msk [vmem:[#allocation7 + $0x8] sm:$0xff] %vm543_vm0, %v1293_v33 }
 0x40b   : > { %v1288_v16 = vpop.xlane.xlu1 %1287  ;;  %v1189_v42 = vpop.xlane.xlu0 %1188 }
 0x40c   : > { %v1294_v44 = vadd.f32 %v1288_v16, %v1278_v31  ;;  %v1197_v61 = vadd.f32 %v1189_v42, %v1177_v34  ;;  %v1192_v3 = vpop.xlane.xlu2 %1191 }
 0x40d   : > { %v1198_v51 = vadd.f32 %v1192_v3, %v1178_v54 }
 0x40e   : > { %1298 = vst.msk [vmem:[#allocation7 + $0x10] sm:$0xff] %vm543_vm0, %v1294_v44 }
 0x40f   : > { %1201 = vst.msk [vmem:[#allocation4 + $0x8] sm:$0xff] %vm543_vm0, %v1197_v61 }
 0x410   : > { %1202 = vst.msk [vmem:[#allocation4 + $0x10] sm:$0xff] %vm543_vm0, %v1198_v51 }
 0x413   : > { %v1186_v37 = vpop.xlane.xlu1 %1185  ;;  %v1320_v39 = vpop.xlane.xlu0 %1319 }
 0x414   : > { %v1196_v25 = vadd.f32 %v1186_v37, %v1176_v45  ;;  %v1326_v58 = vadd.f32 %v1320_v39, %v1306_v18  ;;  %v1314_v59 = vpop.xlane.xlu2 %1313 }
 0x415   : > { %v1324_v56 = vadd.f32 %v1314_v59, %v1304_v49 }
 0x416   : > { %1200 = vst.msk [vmem:[#allocation4] sm:$0xff] %vm543_vm0, %v1196_v25 }
 0x417   : > { %1330 = vst.msk [vmem:[#allocation8 + $0x10] sm:$0xff] %vm543_vm0, %v1326_v58 }
 0x418   : > { %1328 = vst.msk [vmem:[#allocation8] sm:$0xff] %vm543_vm0, %v1324_v56 }
 0x41b   : > { %v1195_v22 = vpop.xlane.xlu1 %1194 }
 0x41c   : > { %v1199_v1 = vadd.f32 %v1195_v22, %v1179_v55  ;;  %v1323_v20 = vpop.xlane.xlu2 %1322 }
 0x41d   : > { %v1327_v21 = vadd.f32 %v1323_v20, %v1307_v4 }
 0x41e   : > { %1203 = vst.msk [vmem:[#allocation4 + $0x18] sm:$0xff] %vm543_vm0, %v1199_v1 }
 0x41f   : > { %1331 = vst.msk [vmem:[#allocation8 + $0x18] sm:$0xff] %vm543_vm0, %v1327_v21 }
 0x423   : > { %v1317_v43 = vpop.xlane.xlu1 %1316 }
 0x424   : > { %v1325_v53 = vadd.f32 %v1317_v43, %v1305_v24 }
 0x426   : > { %1329 = vst.msk [vmem:[#allocation8 + $0x8] sm:$0xff] %vm543_vm0, %v1325_v53 }
 0x427 PF: > { %v2699_v60 = vld [vmem:[#allocation2] sm:$0xff]  ;;  %v2705_v23 = vld [vmem:[#allocation2 + $0x8] sm:$0xff]  ;;  %v2715_v11 = vld [vmem:[#allocation2 + $0x10] sm:$0xff] }
 0x428   : > { %v1347_v62 = vld [vmem:[#allocation5] sm:$0xff]  ;;  %v1772_v2 = vadd.f32 28.077309, %v2699_v60  ;;  %v1348_v7 = vld [vmem:[#allocation5 + $0x8] sm:$0xff]  ;;  %v1773_v48 = vadd.f32 28.077309, %v2705_v23 }
 0x429   : > { %v2702_v27 = vld [vmem:[#allocation6] sm:$0xff]  ;;  %v2710_v5 = vld [vmem:[#allocation6 + $0x8] sm:$0xff]  ;;  %v1774_v50 = vadd.f32 28.077309, %v2715_v11  ;;  %v2722_v63 = vld [vmem:[#allocation6 + $0x10] sm:$0xff] }
 0x42a   : > { %v1415_v28 = vld [vmem:[#allocation9] sm:$0xff]  ;;  %v1776_v32 = vadd.f32 28.077309, %v2702_v27  ;;  %v2707_v8 = vmax.f32 %v1772_v2, %v1347_v62  ;;  %v1416_v35 = vld [vmem:[#allocation9 + $0x8] sm:$0xff]  ;;  %v1777_v12 = vadd.f32 28.077309, %v2710_v5  ;;  %v2719_v40 = vmax.f32 %v1773_v48, %v1348_v7 }
 0x42b   : > { %v1349_v15 = vld [vmem:[#allocation5 + $0x10] sm:$0xff]  ;;  %v1778_v30 = vadd.f32 28.077309, %v2722_v63  ;;  %v2733_v42 = vld [vmem:[#allocation2 + $0x18] sm:$0xff]  ;;  %v1355_v58 = vld [vmem:[#allocation3] sm:$0xff] }
 0x42c   : > { %v2712_v36 = vmax.f32 %v1776_v32, %v1415_v28  ;;  %v1359_v13 = vsub.f32 %v1772_v2, %v2707_v8  ;;  %v1375_v10 = vsub.f32 %v1347_v62, %v2707_v8  ;;  %v2726_v14 = vmax.f32 %v1777_v12, %v1416_v35  ;;  %v1417_v0 = vld [vmem:[#allocation9 + $0x10] sm:$0xff]  ;;  %v2737_v61 = vld [vmem:[#allocation6 + $0x18] sm:$0xff]  ;;  %v1423_v22 = vld [vmem:[#allocation7] sm:$0xff] }
 0x42d   : > { %v1360_v26 = vsub.f32 %v1773_v48, %v2719_v40  ;;  %v1376_v47 = vsub.f32 %v1348_v7, %v2719_v40  ;;  %v2735_v44 = vmax.f32 %v1774_v50, %v1349_v15  ;;  %v2739_v46 = vmax.f32 %v1778_v30, %v1417_v0  ;;  %v1350_v57 = vld [vmem:[#allocation5 + $0x18] sm:$0xff]  ;;  %v1356_v43 = vld [vmem:[#allocation3 + $0x8] sm:$0xff] }
 0x42e   : > { %v1427_v9 = vsub.f32 %v1776_v32, %v2712_v36  ;;  %v1443_v41 = vsub.f32 %v1415_v28, %v2712_v36  ;;  %v1363_v29 = vmul.f32 1.442695, %v1359_v13  ;;  %v1379_v33 = vmul.f32 1.442695, %v1375_v10  ;;  %v1418_v25 = vld [vmem:[#allocation9 + $0x18] sm:$0xff]  ;;  %v1424_v48 = vld [vmem:[#allocation7 + $0x8] sm:$0xff] }
 0x42f   : > { %v1428_v34 = vsub.f32 %v1777_v12, %v2726_v14  ;;  %v1444_v16 = vsub.f32 %v1416_v35, %v2726_v14  ;;  %v1365_v54 = vmul.f32 1.442695, %v1360_v26  ;;  %v1381_v3 = vmul.f32 1.442695, %v1376_v47 }
 0x430   : > { %v1431_v6 = vmul.f32 1.442695, %v1427_v9  ;;  %v1447_v31 = vmul.f32 1.442695, %v1443_v41  ;;  %1913 = vpow2.f32 %v1363_v29  ;;  %v1361_v17 = vsub.f32 %v1774_v50, %v2735_v44  ;;  %v1357_v41 = vld [vmem:[#allocation3 + $0x10] sm:$0xff] }
 0x431   : > { %1915 = vpow2.f32 %v1379_v33  ;;  %v1433_v51 = vmul.f32 1.442695, %v1428_v34  ;;  %v1377_v45 = vsub.f32 %v1349_v15, %v2735_v44  ;;  %v1775_v18 = vadd.f32 28.077309, %v2733_v42 }
 0x432   : > { %1917 = vpow2.f32 %v1431_v6  ;;  %v1449_v37 = vmul.f32 1.442695, %v1444_v16  ;;  %v1429_v39 = vsub.f32 %v1778_v30, %v2739_v46  ;;  %v1779_v49 = vadd.f32 28.077309, %v2737_v61 }
 0x433   : > { %1919 = vpow2.f32 %v1447_v31  ;;  %v1367_v59 = vmul.f32 1.442695, %v1361_v17  ;;  %v1445_v56 = vsub.f32 %v1417_v0, %v2739_v46  ;;  %v2747_v19 = vmax.f32 %v1775_v18, %v1350_v57  ;;  %v1425_v0 = vld [vmem:[#allocation7 + $0x10] sm:$0xff] }
 0x434   : > { %1921 = vpow2.f32 %v1365_v54  ;;  %v1383_v52 = vmul.f32 1.442695, %v1377_v45  ;;  %v1435_v4 = vmul.f32 1.442695, %v1429_v39  ;;  %v2750_v20 = vmax.f32 %v1779_v49, %v1418_v25 }
 0x435   : > { %1923 = vpow2.f32 %v1381_v3  ;;  %v1362_v1 = vsub.f32 %v1775_v18, %v2747_v19  ;;  %v1451_v53 = vmul.f32 1.442695, %v1445_v56  ;;  %v1378_v62 = vsub.f32 %v1350_v57, %v2747_v19 }
 0x436   : > { %v1914_v55 = vpop.eup %1913  ;;  %1925 = vpow2.f32 %v1433_v51  ;;  %v1430_v12 = vsub.f32 %v1779_v49, %v2750_v20  ;;  %v1446_v30 = vsub.f32 %v1418_v25, %v2750_v20 }
 0x437   : > { %v1916_v21 = vpop.eup %1915  ;;  %v1371_v38 = vmul.f32 %v1914_v55, %v1355_v58  ;;  %1927 = vpow2.f32 %v1449_v37  ;;  %v1369_v35 = vmul.f32 1.442695, %v1362_v1  ;;  %v1385_v15 = vmul.f32 1.442695, %v1378_v62  ;;  %v1358_v37 = vld [vmem:[#allocation3 + $0x18] sm:$0xff] }
 0x438   : > { %v1918_v24 = vpop.eup %1917  ;;  %1929 = vpow2.f32 %v1367_v59  ;;  %v1437_v6 = vmul.f32 1.442695, %v1430_v12  ;;  %v1453_v3 = vmul.f32 1.442695, %v1446_v30 }
 0x439   : > { %v1920_v2 = vpop.eup %1919  ;;  %v1387_v28 = vadd.f32 %v1916_v21, %v1371_v38  ;;  %v1439_v32 = vmul.f32 %v1918_v24, %v1423_v22  ;;  %1931 = vpow2.f32 %v1383_v52  ;;  %v1426_v21 = vld [vmem:[#allocation7 + $0x18] sm:$0xff] }
 0x43a   : > { %v1922_v7 = vpop.eup %1921  ;;  %1933 = vpow2.f32 %v1435_v4 }
 0x43b   : > { %v1924_v13 = vpop.eup %1923  ;;  %1935 = vlog2.f32 %v1387_v28  ;;  %v1455_v10 = vadd.f32 %v1920_v2, %v1439_v32  ;;  %v1372_v50 = vmul.f32 %v1922_v7, %v1356_v43 }
 0x43c   : > { %v1926_v9 = vpop.eup %1925  ;;  %1937 = vpow2.f32 %v1451_v53 }
 0x43d   : > { %v1928_v29 = vpop.eup %1927  ;;  %1939 = vlog2.f32 %v1455_v10  ;;  %v1388_v33 = vadd.f32 %v1924_v13, %v1372_v50  ;;  %v1440_v26 = vmul.f32 %v1926_v9, %v1424_v48 }
 0x43e   : > { %v1930_v47 = vpop.eup %1929  ;;  %1941 = vpow2.f32 %v1369_v35 }
 0x43f   : > { %v1932_v31 = vpop.eup %1931  ;;  %1943 = vlog2.f32 %v1388_v33  ;;  %v1456_v34 = vadd.f32 %v1928_v29, %v1440_v26  ;;  %v1373_v16 = vmul.f32 %v1930_v47, %v1357_v41 }
 0x440   : > { %v1934_v54 = vpop.eup %1933  ;;  %1945 = vpow2.f32 %v1385_v15 }
 0x441   : > { %v1936_v51 = vpop.eup %1935  ;;  %1947 = vlog2.f32 %v1456_v34  ;;  %v1389_v57 = vadd.f32 %v1932_v31, %v1373_v16  ;;  %v1441_v17 = vmul.f32 %v1934_v54, %v1425_v0  ;;  %v1499_v31 = vld [vmem:[#allocation8] sm:$0xff] }
 0x442   : > { %v1938_v45 = vpop.eup %1937  ;;  %v1392_v18 = vmul.f32 0.6931472, %v1936_v51  ;;  %1949 = vpow2.f32 %v1437_v6  ;;  %v1476_v51 = vld [vmem:[#allocation4 + $0x8] sm:$0xff] }
 0x443   : > { %v1940_v39 = vpop.eup %1939  ;;  %1951 = vlog2.f32 %v1389_v57  ;;  %v1457_v49 = vadd.f32 %v1938_v45, %v1441_v17 }
 0x444   : > { %v1942_v25 = vpop.eup %1941  ;;  %v1399_v58 = vadd.f32 %v1392_v18, %v2707_v8  ;;  %v1460_v59 = vmul.f32 0.6931472, %v1940_v39  ;;  %1953 = vpow2.f32 %v1453_v3  ;;  %v1500_v39 = vld [vmem:[#allocation8 + $0x8] sm:$0xff] }
 0x445   : > { %v1944_v56 = vpop.eup %1943  ;;  %1955 = vlog2.f32 %v1457_v49  ;;  %v1374_v52 = vmul.f32 %v1942_v25, %v1358_v37 }
 0x446   : > { %v1946_v55 = vpop.eup %1945  ;;  %v1403_v22 = vadd.f32 -32.23619, %v1399_v58  ;;  %v1467_v4 = vadd.f32 %v1460_v59, %v2712_v36  ;;  %v1394_v1 = vmul.f32 0.6931472, %v1944_v56 }
 0x447   : > { %v1948_v38 = vpop.eup %1947  ;;  %v1390_v24 = vadd.f32 %v1946_v55, %v1374_v52 }
 0x448   : > { %v1950_v43 = vpop.eup %1949  ;;  %v1479_v53 = vsub.f32 %v2699_v60, %v1403_v22  ;;  %1524 = vst.msk [vmem:[%s2143_s30] sm:$0xff] %vm543_vm0, %v1403_v22  ;;  %v1471_v8 = vadd.f32 -32.23619, %v1467_v4  ;;  %v1400_v62 = vadd.f32 %v1394_v1, %v2719_v40  ;;  %v1462_v2 = vmul.f32 0.6931472, %v1948_v38  ;;  %v1477_v4 = vld [vmem:[#allocation4 + $0x10] sm:$0xff] }
 0x449   : > { %v1952_v28 = vpop.eup %1951  ;;  %1957 = vlog2.f32 %v1390_v24  ;;  %v1442_v32 = vmul.f32 %v1950_v43, %v1426_v21  ;;  %v1501_v21 = vld [vmem:[#allocation8 + $0x10] sm:$0xff] }
 0x44a   : > { %v1954_v7 = vpop.eup %1953  ;;  %v1483_v36 = vmul.f32 1.442695, %v1479_v53  ;;  %v1503_v48 = vsub.f32 %v2702_v27, %v1471_v8  ;;  %1528 = vst.msk [vmem:[%s2150_s13] sm:$0xff] %vm543_vm0, %v1471_v8  ;;  %v1404_v35 = vadd.f32 -32.23619, %v1400_v62  ;;  %v1468_v60 = vadd.f32 %v1462_v2, %v2726_v14  ;;  %v1478_v2 = vld [vmem:[#allocation4 + $0x18] sm:$0xff] }
 0x44b   : > { %v1956_v12 = vpop.eup %1955  ;;  %v1396_v13 = vmul.f32 0.6931472, %v1952_v28  ;;  %v1458_v10 = vadd.f32 %v1954_v7, %v1442_v32 }
 0x44c   : > { %1959 = vpow2.f32 %v1483_v36  ;;  %v1507_v40 = vmul.f32 1.442695, %v1503_v48  ;;  %v1480_v50 = vsub.f32 %v2705_v23, %v1404_v35  ;;  %1525 = vst.msk [vmem:[%s2143_s30 + $0x8] sm:$0xff] %vm543_vm0, %v1404_v35  ;;  %v1472_v9 = vadd.f32 -32.23619, %v1468_v60  ;;  %v1475_v23 = vld [vmem:[#allocation4] sm:$0xff] }
 0x44d   : > { %v1401_v41 = vadd.f32 %v1396_v13, %v2735_v44  ;;  %v1464_v27 = vmul.f32 0.6931472, %v1956_v12  ;;  %1961 = vlog2.f32 %v1458_v10  ;;  %v1502_v36 = vld [vmem:[#allocation8 + $0x18] sm:$0xff] }
 0x44e   : > { %1963 = vpow2.f32 %v1507_v40  ;;  %v1485_v15 = vmul.f32 1.442695, %v1480_v50  ;;  %v1504_v30 = vsub.f32 %v2710_v5, %v1472_v9  ;;  %1529 = vst.msk [vmem:[%s2150_s13 + $0x8] sm:$0xff] %vm543_vm0, %v1472_v9 }
 0x44f   : > { %v1958_v14 = vpop.eup %1957  ;;  %v1405_v29 = vadd.f32 -32.23619, %v1401_v41  ;;  %v1469_v33 = vadd.f32 %v1464_v27, %v2739_v46 }
 0x450   : > { %1965 = vpow2.f32 %v1485_v15  ;;  %v1509_v26 = vmul.f32 1.442695, %v1504_v30  ;;  %v1398_v47 = vmul.f32 0.6931472, %v1958_v14 }
 0x451   : > { %v1481_v0 = vsub.f32 %v2715_v11, %v1405_v29  ;;  %1526 = vst.msk [vmem:[%s2143_s30 + $0x10] sm:$0xff] %vm543_vm0, %v1405_v29  ;;  %v1473_v44 = vadd.f32 -32.23619, %v1469_v33 }
 0x452   : > { %v1960_v6 = vpop.eup %1959  ;;  %1967 = vpow2.f32 %v1509_v26  ;;  %v1402_v5 = vadd.f32 %v1398_v47, %v2747_v19 }
 0x453   : > { %v1962_v34 = vpop.eup %1961  ;;  %v1491_v16 = vmul.f32 %v1960_v6, %v1475_v23  ;;  %v1487_v54 = vmul.f32 1.442695, %v1481_v0  ;;  %v1505_v46 = vsub.f32 %v2722_v63, %v1473_v44  ;;  %1530 = vst.msk [vmem:[%s2150_s13 + $0x10] sm:$0xff] %vm543_vm0, %v1473_v44 }
 0x454   : > { %v1964_v3 = vpop.eup %1963  ;;  %v1406_v57 = vadd.f32 -32.23619, %v1402_v5  ;;  %v1466_v11 = vmul.f32 0.6931472, %v1962_v34 }
 0x455   : > { %v1495_v17 = vmul.f32 0.015873017, %v1491_v16  ;;  %v1515_v45 = vmul.f32 %v1964_v3, %v1499_v31  ;;  %1969 = vpow2.f32 %v1487_v54  ;;  %v1511_v18 = vmul.f32 1.442695, %v1505_v46 }
 0x456   : > { %v1966_v37 = vpop.eup %1965  ;;  %v1482_v19 = vsub.f32 %v2733_v42, %v1406_v57  ;;  %1527 = vst.msk [vmem:[%s2143_s30 + $0x18] sm:$0xff] %vm543_vm0, %v1406_v57  ;;  %v1470_v63 = vadd.f32 %v1466_v11, %v2750_v20 }
 0x457   : > { %v1519_v49 = vmul.f32 0.015873017, %v1515_v45  ;;  %v1492_v25 = vmul.f32 %v1966_v37, %v1476_v51  ;;  %1971 = vpow2.f32 %v1511_v18 }
 0x458   : > { %v1968_v58 = vpop.eup %1967  ;;  %v1489_v59 = vmul.f32 1.442695, %v1482_v19  ;;  %v1474_v56 = vadd.f32 -32.23619, %v1470_v63 }
 0x459   : > { %v1532_v52 = vadd.f32 %v1519_v49, %v1495_v17  ;;  %v1496_v55 = vmul.f32 0.015873017, %v1492_v25  ;;  %v1516_v22 = vmul.f32 %v1968_v58, %v1500_v39 }
 0x45a   : > { %1973 = vpow2.f32 %v1489_v59  ;;  %v1506_v1 = vsub.f32 %v2737_v61, %v1474_v56  ;;  %1531 = vst.msk [vmem:[%s2150_s13 + $0x18] sm:$0xff] %vm543_vm0, %v1474_v56 }
 0x45b   : > { %v1970_v42 = vpop.eup %1969  ;;  %1536 = vst.msk [vmem:[%s2156_s17] sm:$0xff] %vm543_vm0, %v1532_v52  ;;  %v1520_v20 = vmul.f32 0.015873017, %v1516_v22 }
 0x45c   : > { %v1493_v38 = vmul.f32 %v1970_v42, %v1477_v4  ;;  %v1513_v24 = vmul.f32 1.442695, %v1506_v1 }
 0x45d   : > { %v1972_v43 = vpop.eup %1971  ;;  %v1533_v53 = vadd.f32 %v1520_v20, %v1496_v55 }
 0x45e   : > { %v1497_v8 = vmul.f32 0.015873017, %v1493_v38  ;;  %v1517_v62 = vmul.f32 %v1972_v43, %v1501_v21  ;;  %1975 = vpow2.f32 %v1513_v24 }
 0x45f   : > { %1537 = vst.msk [vmem:[%s2156_s17 + $0x8] sm:$0xff] %vm543_vm0, %v1533_v53 }
 0x460   : > { %v1974_v61 = vpop.eup %1973  ;;  %v1521_v28 = vmul.f32 0.015873017, %v1517_v62 }
 0x461   : > { %v1494_v32 = vmul.f32 %v1974_v61, %v1478_v2 }
 0x462   : > { %v1534_v7 = vadd.f32 %v1521_v28, %v1497_v8 }
 0x463   : > { %v1498_v35 = vmul.f32 0.015873017, %v1494_v32 }
 0x464   : > { %v1976_v48 = vpop.eup %1975  ;;  %1538 = vst.msk [vmem:[%s2156_s17 + $0x10] sm:$0xff] %vm543_vm0, %v1534_v7 }
 0x465   : > { %v1518_v60 = vmul.f32 %v1976_v48, %v1502_v36 }
 0x467   : > { %v1522_v12 = vmul.f32 0.015873017, %v1518_v60 }
 0x469   : > { %v1535_v13 = vadd.f32 %v1522_v12, %v1498_v35 }
 0x46b   : > { %1539 = vst.msk [vmem:[%s2156_s17 + $0x18] sm:$0xff] %vm543_vm0, %v1535_v13 }
 0x46c PF: > { %s23_s16 = sadd.s32 1, %s2033_s16   ;;  %s2824_s15 = smov %s2029_s6 }
 0x46d   : > { %p20_p11 = scmp.ge.s32.totalorder %s23_s16, 4   ;;  %s2825_s6 = smov %s2827_s7 }
 0x46f   :  { %22 = sbr.rel (!%p20_p11) target bundleno = 4 (0x4), region = 143 }
 0x474   :  { %1596 = vsyncpa [#allocation12], 1 }
 0x475   :  { %1598 = vsyncpa [#allocation12 + $0x1], 1 }

</bundles_post_ra>
